<compile_context>
chip_gen: v7x
topology: tpu7x:2x2x1
jax: 0.10.0
libtpu: 0.0.40
codegen_flags: <defaults>
</compile_context>

<pallas_src>
import functools

import jax
import jax.numpy as jnp
from jax import lax
from jax.experimental import pallas as pl
from jax.experimental.pallas import tpu as pltpu

LEAKY_SLOPE = 0.2
LN_EPS = 1e-5
DIMS = (512, 128, 32, 8)   # layer output widths


def _round_up(x, m):
    return ((x + m - 1) // m) * m


def _mlp_block(h, w_ref, b_ref, g_ref, beta_ref, *, tail_dtype):
    """Linear (bf16 MXU, f32 accum) -> LayerNorm -> LeakyReLU.

    LN statistics are always f32; the affine + activation tail runs in
    `tail_dtype` (bf16 on v6e/v7x to halve VALU work, f32 otherwise).
    """
    y = jnp.dot(h.astype(jnp.bfloat16), w_ref[...],
                preferred_element_type=jnp.float32) + b_ref[...]
    # One-pass LayerNorm statistics: one pair of cross-lane reductions.
    mu = jnp.mean(y, axis=-1, keepdims=True)
    ex2 = jnp.mean(y * y, axis=-1, keepdims=True)
    var = jnp.maximum(ex2 - mu * mu, 0.0)
    yhat = ((y - mu) * lax.rsqrt(var + LN_EPS)).astype(tail_dtype)
    z = yhat * g_ref[...].astype(tail_dtype) + beta_ref[...].astype(tail_dtype)
    # LeakyReLU with 0 < slope < 1  ==  max(z, slope*z).
    return jnp.maximum(z, LEAKY_SLOPE * z)


def discriminator_kernel(x_ref,
                         w1_ref, b1_ref, g1_ref, be1_ref,
                         w2_ref, b2_ref, g2_ref, be2_ref,
                         w3_ref, b3_ref, g3_ref, be3_ref,
                         w4_ref, b4_ref, g4_ref, be4_ref,
                         o_ref, *, bf16_tail):
    tail = jnp.bfloat16 if bf16_tail else jnp.float32
    h = x_ref[...]
    h = _mlp_block(h, w1_ref, b1_ref, g1_ref, be1_ref, tail_dtype=tail)
    h = _mlp_block(h, w2_ref, b2_ref, g2_ref, be2_ref, tail_dtype=tail)
    h = _mlp_block(h, w3_ref, b3_ref, g3_ref, be3_ref, tail_dtype=tail)
    # Final (width-8) layer: f32 tail so the stored output keeps full precision;
    # its elementwise cost is negligible (8 lanes).
    h = _mlp_block(h, w4_ref, b4_ref, g4_ref, be4_ref, tail_dtype=jnp.float32)
    o_ref[...] = h.astype(o_ref.dtype)


def init_params(z_dim, key):
    """Deterministic synthetic params matching PyTorch Linear/LayerNorm shapes."""
    params = []
    in_dim = z_dim
    for out_dim in DIMS:
        key, kw, kb = jax.random.split(key, 3)
        bound = 1.0 / float(in_dim) ** 0.5
        # stored as [in, out] (transpose of torch's [out, in])
        w = jax.random.uniform(kw, (in_dim, out_dim), jnp.float32, -bound, bound)
        b = jax.random.uniform(kb, (1, out_dim), jnp.float32, -bound, bound)
        gamma = jnp.ones((1, out_dim), jnp.float32)   # LayerNorm default weight
        beta = jnp.zeros((1, out_dim), jnp.float32)   # LayerNorm default bias
        params += [w, b, gamma, beta]
        in_dim = out_dim
    return params


def _choose_tile(B, tb):
    """Pick the batch tile: large tiles for low per-step overhead, but keep
    >=2 grid steps when possible so v7x's 2 TensorCores both get work."""
    Bp8 = _round_up(B, 8)
    tb_eff = min(tb, Bp8)
    if tb_eff >= Bp8 and Bp8 > 8:          # whole batch fit in one tile -> split
        tb_eff = _round_up((Bp8 + 1) // 2, 8)
    Bp = _round_up(Bp8, tb_eff)
    return tb_eff, Bp


@functools.partial(jax.jit, static_argnames=("tb", "bf16_tail"))
def discriminator_forward(x, params, *, tb=1024, bf16_tail=False):
    B, Z = x.shape

    # Weights to bf16 (MXU path); biases / gamma / beta stay f32 (LN stats and
    # bias-add are f32 regardless of tail dtype).  x stays f32 -- it is cast to
    # bf16 inside the kernel, avoiding an extra HBM round-trip.
    params = [p.astype(jnp.bfloat16) if i % 4 == 0 else p
              for i, p in enumerate(params)]

    tb_eff, Bp = _choose_tile(B, tb)
    x_in = x
    if Bp != B:
        # Zero rows through LayerNorm stay finite thanks to eps; sliced off below.
        x_in = jnp.pad(x_in, ((0, Bp - B), (0, 0)))

    x_spec = pl.BlockSpec((tb_eff, Z), lambda i: (i, 0))
    # Output block's last dim equals the full (8-wide) array dim -> legal and
    # 16x less HBM writeback than a padded 128-lane output.
    out_spec = pl.BlockSpec((tb_eff, DIMS[-1]), lambda i: (i, 0))
    # Parameters (~0.4 MB) stay fully VMEM-resident; the constant block index
    # means Pallas only DMAs them on the first grid step.
    param_specs = [
        pl.BlockSpec(p.shape, lambda i, nd=p.ndim: (0,) * nd) for p in params
    ]

    kernel = functools.partial(discriminator_kernel, bf16_tail=bf16_tail)

    out = pl.pallas_call(
        kernel,
        out_shape=jax.ShapeDtypeStruct((Bp, DIMS[-1]), jnp.float32),
        grid_spec=pltpu.PrefetchScalarGridSpec(
            num_scalar_prefetch=0,
            grid=(Bp // tb_eff,),
            in_specs=[x_spec] + param_specs,
            out_specs=out_spec,
        ),
        compiler_params=pltpu.CompilerParams(
            dimension_semantics=("parallel",)),
    )(x_in, *params)

    return out[:B]


def _default_bf16_tail():
    """Enable the bf16 elementwise tail only on bf16-VALU chips (v6e / v7x)."""
    try:
        kind = jax.devices()[0].device_kind.lower()
    except Exception:
        return False
    return any(tag in kind for tag in ("v6", "v7", "7x"))


def reference_forward(x, params, *, bf16_tail=False):
    """Pure-JAX reference mirroring the kernel's mixed-precision policy
    (two-pass LayerNorm statistics instead of one-pass)."""
    h = x.astype(jnp.float32)
    for li in range(4):
        w, b, g, beta = params[4 * li: 4 * li + 4]
        tail = jnp.bfloat16 if (bf16_tail and li < 3) else jnp.float32
        y = jnp.dot(h.astype(jnp.bfloat16), w.astype(jnp.bfloat16),
                    preferred_element_type=jnp.float32) + b
        mu = jnp.mean(y, axis=-1, keepdims=True)
        var = jnp.mean((y - mu) ** 2, axis=-1, keepdims=True)
        yhat = ((y - mu) / jnp.sqrt(var + LN_EPS)).astype(tail)
        z = yhat * g.astype(tail) + beta.astype(tail)
        h = jnp.maximum(z, LEAKY_SLOPE * z)
    return h.astype(jnp.float32)


if __name__ == "__main__":
    key = jax.random.PRNGKey(0)
    kx, kp = jax.random.split(key)

    B, Z_DIM = 64, 64
    x = jax.random.normal(kx, (B, Z_DIM), jnp.float32)
    params = init_params(Z_DIM, kp)

    bf16_tail = _default_bf16_tail()

    out = discriminator_forward(x, params, bf16_tail=bf16_tail)
    out = jax.block_until_ready(out)

    ref = reference_forward(x, params, bf16_tail=bf16_tail)
    assert out.shape == (B, 8)
    err = float(jnp.max(jnp.abs(out - ref)))
    tol = 8e-3 if bf16_tail else 2e-3
    assert jnp.allclose(out, ref, atol=tol, rtol=tol), (
        "mismatch vs JAX reference: max abs err = %g" % err)

    print("KERNEL_OK")
</pallas_src>

<mosaic_0001>
module attributes {stable_mosaic.version = 11 : i64} {
  func.func @discriminator_kernel(%arg0: i32, %arg1: memref<32x64xf32, #tpu.memory_space<vmem>>, %arg2: memref<64x512xbf16, #tpu.memory_space<vmem>>, %arg3: memref<1x512xf32, #tpu.memory_space<vmem>>, %arg4: memref<1x512xf32, #tpu.memory_space<vmem>>, %arg5: memref<1x512xf32, #tpu.memory_space<vmem>>, %arg6: memref<512x128xbf16, #tpu.memory_space<vmem>>, %arg7: memref<1x128xf32, #tpu.memory_space<vmem>>, %arg8: memref<1x128xf32, #tpu.memory_space<vmem>>, %arg9: memref<1x128xf32, #tpu.memory_space<vmem>>, %arg10: memref<128x32xbf16, #tpu.memory_space<vmem>>, %arg11: memref<1x32xf32, #tpu.memory_space<vmem>>, %arg12: memref<1x32xf32, #tpu.memory_space<vmem>>, %arg13: memref<1x32xf32, #tpu.memory_space<vmem>>, %arg14: memref<32x8xbf16, #tpu.memory_space<vmem>>, %arg15: memref<1x8xf32, #tpu.memory_space<vmem>>, %arg16: memref<1x8xf32, #tpu.memory_space<vmem>>, %arg17: memref<1x8xf32, #tpu.memory_space<vmem>>, %arg18: memref<32x8xf32, #tpu.memory_space<vmem>>) attributes {dimension_semantics = [#tpu.dimension_semantics<parallel>], iteration_bounds = array<i64: 2>, scalar_prefetch = 0 : i64, scratch_operands = 0 : i64, tpu.core_type = #tpu.core_type<tc>, window_params = [{transform_indices = @transform_0, window_bounds = array<i64: 32, 64>}, {pipeline_mode = #tpu.pipeline_mode<synchronous>, transform_indices = @transform_1, window_bounds = array<i64: 64, 512>}, {pipeline_mode = #tpu.pipeline_mode<synchronous>, transform_indices = @transform_2, window_bounds = array<i64: 1, 512>}, {pipeline_mode = #tpu.pipeline_mode<synchronous>, transform_indices = @transform_3, window_bounds = array<i64: 1, 512>}, {pipeline_mode = #tpu.pipeline_mode<synchronous>, transform_indices = @transform_4, window_bounds = array<i64: 1, 512>}, {pipeline_mode = #tpu.pipeline_mode<synchronous>, transform_indices = @transform_5, window_bounds = array<i64: 512, 128>}, {pipeline_mode = #tpu.pipeline_mode<synchronous>, transform_indices = @transform_6, window_bounds = array<i64: 1, 128>}, {pipeline_mode = #tpu.pipeline_mode<synchronous>, transform_indices = @transform_7, window_bounds = array<i64: 1, 128>}, {pipeline_mode = #tpu.pipeline_mode<synchronous>, transform_indices = @transform_8, window_bounds = array<i64: 1, 128>}, {pipeline_mode = #tpu.pipeline_mode<synchronous>, transform_indices = @transform_9, window_bounds = array<i64: 128, 32>}, {pipeline_mode = #tpu.pipeline_mode<synchronous>, transform_indices = @transform_10, window_bounds = array<i64: 1, 32>}, {pipeline_mode = #tpu.pipeline_mode<synchronous>, transform_indices = @transform_11, window_bounds = array<i64: 1, 32>}, {pipeline_mode = #tpu.pipeline_mode<synchronous>, transform_indices = @transform_12, window_bounds = array<i64: 1, 32>}, {pipeline_mode = #tpu.pipeline_mode<synchronous>, transform_indices = @transform_13, window_bounds = array<i64: 32, 8>}, {pipeline_mode = #tpu.pipeline_mode<synchronous>, transform_indices = @transform_14, window_bounds = array<i64: 1, 8>}, {pipeline_mode = #tpu.pipeline_mode<synchronous>, transform_indices = @transform_15, window_bounds = array<i64: 1, 8>}, {pipeline_mode = #tpu.pipeline_mode<synchronous>, transform_indices = @transform_16, window_bounds = array<i64: 1, 8>}, {transform_indices = @transform_17, window_bounds = array<i64: 32, 8>}]} {
    %c0 = arith.constant 0 : index
    %c0_0 = arith.constant 0 : index
    %0 = vector.load %arg1[%c0, %c0_0] : memref<32x64xf32, #tpu.memory_space<vmem>>, vector<32x64xf32>
    %1 = arith.truncf %0 : vector<32x64xf32> to vector<32x64xbf16>
    %c0_1 = arith.constant 0 : index
    %c0_2 = arith.constant 0 : index
    %2 = vector.load %arg2[%c0_1, %c0_2] : memref<64x512xbf16, #tpu.memory_space<vmem>>, vector<64x512xbf16>
    %cst = arith.constant dense<0.000000e+00> : vector<32x512xf32>
    %3 = tpu.matmul %1, %2, %cst {dimension_numbers = #tpu.dot_dimension_numbers<[1], [0], [0], [1], [0, 0, 1, 1], [], []>} : vector<32x64xbf16>, vector<64x512xbf16>, vector<32x512xf32> -> vector<32x512xf32>
    %c0_3 = arith.constant 0 : index
    %c0_4 = arith.constant 0 : index
    %4 = vector.load %arg3[%c0_3, %c0_4] : memref<1x512xf32, #tpu.memory_space<vmem>>, vector<1x512xf32>
    %5 = vector.broadcast %4 : vector<1x512xf32> to vector<32x512xf32>
    %6 = arith.addf %3, %5 : vector<32x512xf32>
    %cst_5 = arith.constant dense<0.000000e+00> : vector<32xf32>
    %7 = vector.multi_reduction <add>, %6, %cst_5 [1] : vector<32x512xf32> to vector<32xf32>
    %8 = vector.shape_cast %7 : vector<32xf32> to vector<32x1xf32>
    %cst_6 = arith.constant 5.120000e+02 : f32
    %9 = vector.broadcast %cst_6 : f32 to vector<32x1xf32>
    %10 = arith.divf %8, %9 : vector<32x1xf32>
    %11 = arith.mulf %6, %6 : vector<32x512xf32>
    %cst_7 = arith.constant dense<0.000000e+00> : vector<32xf32>
    %12 = vector.multi_reduction <add>, %11, %cst_7 [1] : vector<32x512xf32> to vector<32xf32>
    %13 = vector.shape_cast %12 : vector<32xf32> to vector<32x1xf32>
    %cst_8 = arith.constant 5.120000e+02 : f32
    %14 = vector.broadcast %cst_8 : f32 to vector<32x1xf32>
    %15 = arith.divf %13, %14 : vector<32x1xf32>
    %16 = arith.mulf %10, %10 : vector<32x1xf32>
    %17 = arith.subf %15, %16 : vector<32x1xf32>
    %cst_9 = arith.constant 0.000000e+00 : f32
    %18 = vector.broadcast %cst_9 : f32 to vector<32x1xf32>
    %19 = arith.maximumf %17, %18 : vector<32x1xf32>
    %20 = vector.broadcast %10 : vector<32x1xf32> to vector<32x512xf32>
    %21 = arith.subf %6, %20 : vector<32x512xf32>
    %cst_10 = arith.constant 9.99999974E-6 : f32
    %22 = vector.broadcast %cst_10 : f32 to vector<32x1xf32>
    %23 = arith.addf %19, %22 : vector<32x1xf32>
    %24 = math.rsqrt %23 : vector<32x1xf32>
    %25 = vector.broadcast %24 : vector<32x1xf32> to vector<32x512xf32>
    %26 = arith.mulf %21, %25 : vector<32x512xf32>
    %c0_11 = arith.constant 0 : index
    %c0_12 = arith.constant 0 : index
    %27 = vector.load %arg4[%c0_11, %c0_12] : memref<1x512xf32, #tpu.memory_space<vmem>>, vector<1x512xf32>
    %28 = vector.broadcast %27 : vector<1x512xf32> to vector<32x512xf32>
    %29 = arith.mulf %26, %28 : vector<32x512xf32>
    %c0_13 = arith.constant 0 : index
    %c0_14 = arith.constant 0 : index
    %30 = vector.load %arg5[%c0_13, %c0_14] : memref<1x512xf32, #tpu.memory_space<vmem>>, vector<1x512xf32>
    %31 = vector.broadcast %30 : vector<1x512xf32> to vector<32x512xf32>
    %32 = arith.addf %29, %31 : vector<32x512xf32>
    %cst_15 = arith.constant 2.000000e-01 : f32
    %33 = vector.broadcast %cst_15 : f32 to vector<32x512xf32>
    %34 = arith.mulf %33, %32 : vector<32x512xf32>
    %35 = arith.maximumf %32, %34 : vector<32x512xf32>
    %36 = arith.truncf %35 : vector<32x512xf32> to vector<32x512xbf16>
    %c0_16 = arith.constant 0 : index
    %c0_17 = arith.constant 0 : index
    %37 = vector.load %arg6[%c0_16, %c0_17] : memref<512x128xbf16, #tpu.memory_space<vmem>>, vector<512x128xbf16>
    %cst_18 = arith.constant dense<0.000000e+00> : vector<32x128xf32>
    %38 = tpu.matmul %36, %37, %cst_18 {dimension_numbers = #tpu.dot_dimension_numbers<[1], [0], [0], [1], [0, 0, 1, 1], [], []>} : vector<32x512xbf16>, vector<512x128xbf16>, vector<32x128xf32> -> vector<32x128xf32>
    %c0_19 = arith.constant 0 : index
    %c0_20 = arith.constant 0 : index
    %39 = vector.load %arg7[%c0_19, %c0_20] : memref<1x128xf32, #tpu.memory_space<vmem>>, vector<1x128xf32>
    %40 = vector.broadcast %39 : vector<1x128xf32> to vector<32x128xf32>
    %41 = arith.addf %38, %40 : vector<32x128xf32>
    %cst_21 = arith.constant dense<0.000000e+00> : vector<32xf32>
    %42 = vector.multi_reduction <add>, %41, %cst_21 [1] : vector<32x128xf32> to vector<32xf32>
    %43 = vector.shape_cast %42 : vector<32xf32> to vector<32x1xf32>
    %cst_22 = arith.constant 1.280000e+02 : f32
    %44 = vector.broadcast %cst_22 : f32 to vector<32x1xf32>
    %45 = arith.divf %43, %44 : vector<32x1xf32>
    %46 = arith.mulf %41, %41 : vector<32x128xf32>
    %cst_23 = arith.constant dense<0.000000e+00> : vector<32xf32>
    %47 = vector.multi_reduction <add>, %46, %cst_23 [1] : vector<32x128xf32> to vector<32xf32>
    %48 = vector.shape_cast %47 : vector<32xf32> to vector<32x1xf32>
    %cst_24 = arith.constant 1.280000e+02 : f32
    %49 = vector.broadcast %cst_24 : f32 to vector<32x1xf32>
    %50 = arith.divf %48, %49 : vector<32x1xf32>
    %51 = arith.mulf %45, %45 : vector<32x1xf32>
    %52 = arith.subf %50, %51 : vector<32x1xf32>
    %cst_25 = arith.constant 0.000000e+00 : f32
    %53 = vector.broadcast %cst_25 : f32 to vector<32x1xf32>
    %54 = arith.maximumf %52, %53 : vector<32x1xf32>
    %55 = vector.broadcast %45 : vector<32x1xf32> to vector<32x128xf32>
    %56 = arith.subf %41, %55 : vector<32x128xf32>
    %cst_26 = arith.constant 9.99999974E-6 : f32
    %57 = vector.broadcast %cst_26 : f32 to vector<32x1xf32>
    %58 = arith.addf %54, %57 : vector<32x1xf32>
    %59 = math.rsqrt %58 : vector<32x1xf32>
    %60 = vector.broadcast %59 : vector<32x1xf32> to vector<32x128xf32>
    %61 = arith.mulf %56, %60 : vector<32x128xf32>
    %c0_27 = arith.constant 0 : index
    %c0_28 = arith.constant 0 : index
    %62 = vector.load %arg8[%c0_27, %c0_28] : memref<1x128xf32, #tpu.memory_space<vmem>>, vector<1x128xf32>
    %63 = vector.broadcast %62 : vector<1x128xf32> to vector<32x128xf32>
    %64 = arith.mulf %61, %63 : vector<32x128xf32>
    %c0_29 = arith.constant 0 : index
    %c0_30 = arith.constant 0 : index
    %65 = vector.load %arg9[%c0_29, %c0_30] : memref<1x128xf32, #tpu.memory_space<vmem>>, vector<1x128xf32>
    %66 = vector.broadcast %65 : vector<1x128xf32> to vector<32x128xf32>
    %67 = arith.addf %64, %66 : vector<32x128xf32>
    %cst_31 = arith.constant 2.000000e-01 : f32
    %68 = vector.broadcast %cst_31 : f32 to vector<32x128xf32>
    %69 = arith.mulf %68, %67 : vector<32x128xf32>
    %70 = arith.maximumf %67, %69 : vector<32x128xf32>
    %71 = arith.truncf %70 : vector<32x128xf32> to vector<32x128xbf16>
    %c0_32 = arith.constant 0 : index
    %c0_33 = arith.constant 0 : index
    %72 = vector.load %arg10[%c0_32, %c0_33] : memref<128x32xbf16, #tpu.memory_space<vmem>>, vector<128x32xbf16>
    %cst_34 = arith.constant dense<0.000000e+00> : vector<32x32xf32>
    %73 = tpu.matmul %71, %72, %cst_34 {dimension_numbers = #tpu.dot_dimension_numbers<[1], [0], [0], [1], [0, 0, 1, 1], [], []>} : vector<32x128xbf16>, vector<128x32xbf16>, vector<32x32xf32> -> vector<32x32xf32>
    %c0_35 = arith.constant 0 : index
    %c0_36 = arith.constant 0 : index
    %74 = vector.load %arg11[%c0_35, %c0_36] : memref<1x32xf32, #tpu.memory_space<vmem>>, vector<1x32xf32>
    %75 = vector.broadcast %74 : vector<1x32xf32> to vector<32x32xf32>
    %76 = arith.addf %73, %75 : vector<32x32xf32>
    %cst_37 = arith.constant dense<0.000000e+00> : vector<32xf32>
    %77 = vector.multi_reduction <add>, %76, %cst_37 [1] : vector<32x32xf32> to vector<32xf32>
    %78 = vector.shape_cast %77 : vector<32xf32> to vector<32x1xf32>
    %cst_38 = arith.constant 3.200000e+01 : f32
    %79 = vector.broadcast %cst_38 : f32 to vector<32x1xf32>
    %80 = arith.divf %78, %79 : vector<32x1xf32>
    %81 = arith.mulf %76, %76 : vector<32x32xf32>
    %cst_39 = arith.constant dense<0.000000e+00> : vector<32xf32>
    %82 = vector.multi_reduction <add>, %81, %cst_39 [1] : vector<32x32xf32> to vector<32xf32>
    %83 = vector.shape_cast %82 : vector<32xf32> to vector<32x1xf32>
    %cst_40 = arith.constant 3.200000e+01 : f32
    %84 = vector.broadcast %cst_40 : f32 to vector<32x1xf32>
    %85 = arith.divf %83, %84 : vector<32x1xf32>
    %86 = arith.mulf %80, %80 : vector<32x1xf32>
    %87 = arith.subf %85, %86 : vector<32x1xf32>
    %cst_41 = arith.constant 0.000000e+00 : f32
    %88 = vector.broadcast %cst_41 : f32 to vector<32x1xf32>
    %89 = arith.maximumf %87, %88 : vector<32x1xf32>
    %90 = vector.broadcast %80 : vector<32x1xf32> to vector<32x32xf32>
    %91 = arith.subf %76, %90 : vector<32x32xf32>
    %cst_42 = arith.constant 9.99999974E-6 : f32
    %92 = vector.broadcast %cst_42 : f32 to vector<32x1xf32>
    %93 = arith.addf %89, %92 : vector<32x1xf32>
    %94 = math.rsqrt %93 : vector<32x1xf32>
    %95 = vector.broadcast %94 : vector<32x1xf32> to vector<32x32xf32>
    %96 = arith.mulf %91, %95 : vector<32x32xf32>
    %c0_43 = arith.constant 0 : index
    %c0_44 = arith.constant 0 : index
    %97 = vector.load %arg12[%c0_43, %c0_44] : memref<1x32xf32, #tpu.memory_space<vmem>>, vector<1x32xf32>
    %98 = vector.broadcast %97 : vector<1x32xf32> to vector<32x32xf32>
    %99 = arith.mulf %96, %98 : vector<32x32xf32>
    %c0_45 = arith.constant 0 : index
    %c0_46 = arith.constant 0 : index
    %100 = vector.load %arg13[%c0_45, %c0_46] : memref<1x32xf32, #tpu.memory_space<vmem>>, vector<1x32xf32>
    %101 = vector.broadcast %100 : vector<1x32xf32> to vector<32x32xf32>
    %102 = arith.addf %99, %101 : vector<32x32xf32>
    %cst_47 = arith.constant 2.000000e-01 : f32
    %103 = vector.broadcast %cst_47 : f32 to vector<32x32xf32>
    %104 = arith.mulf %103, %102 : vector<32x32xf32>
    %105 = arith.maximumf %102, %104 : vector<32x32xf32>
    %106 = arith.truncf %105 : vector<32x32xf32> to vector<32x32xbf16>
    %c0_48 = arith.constant 0 : index
    %c0_49 = arith.constant 0 : index
    %107 = vector.load %arg14[%c0_48, %c0_49] : memref<32x8xbf16, #tpu.memory_space<vmem>>, vector<32x8xbf16>
    %cst_50 = arith.constant dense<0.000000e+00> : vector<32x8xf32>
    %108 = tpu.matmul %106, %107, %cst_50 {dimension_numbers = #tpu.dot_dimension_numbers<[1], [0], [0], [1], [0, 0, 1, 1], [], []>} : vector<32x32xbf16>, vector<32x8xbf16>, vector<32x8xf32> -> vector<32x8xf32>
    %c0_51 = arith.constant 0 : index
    %c0_52 = arith.constant 0 : index
    %109 = vector.load %arg15[%c0_51, %c0_52] : memref<1x8xf32, #tpu.memory_space<vmem>>, vector<1x8xf32>
    %110 = vector.broadcast %109 : vector<1x8xf32> to vector<32x8xf32>
    %111 = arith.addf %108, %110 : vector<32x8xf32>
    %cst_53 = arith.constant dense<0.000000e+00> : vector<32xf32>
    %112 = vector.multi_reduction <add>, %111, %cst_53 [1] : vector<32x8xf32> to vector<32xf32>
    %113 = vector.shape_cast %112 : vector<32xf32> to vector<32x1xf32>
    %cst_54 = arith.constant 8.000000e+00 : f32
    %114 = vector.broadcast %cst_54 : f32 to vector<32x1xf32>
    %115 = arith.divf %113, %114 : vector<32x1xf32>
    %116 = arith.mulf %111, %111 : vector<32x8xf32>
    %cst_55 = arith.constant dense<0.000000e+00> : vector<32xf32>
    %117 = vector.multi_reduction <add>, %116, %cst_55 [1] : vector<32x8xf32> to vector<32xf32>
    %118 = vector.shape_cast %117 : vector<32xf32> to vector<32x1xf32>
    %cst_56 = arith.constant 8.000000e+00 : f32
    %119 = vector.broadcast %cst_56 : f32 to vector<32x1xf32>
    %120 = arith.divf %118, %119 : vector<32x1xf32>
    %121 = arith.mulf %115, %115 : vector<32x1xf32>
    %122 = arith.subf %120, %121 : vector<32x1xf32>
    %cst_57 = arith.constant 0.000000e+00 : f32
    %123 = vector.broadcast %cst_57 : f32 to vector<32x1xf32>
    %124 = arith.maximumf %122, %123 : vector<32x1xf32>
    %125 = vector.broadcast %115 : vector<32x1xf32> to vector<32x8xf32>
    %126 = arith.subf %111, %125 : vector<32x8xf32>
    %cst_58 = arith.constant 9.99999974E-6 : f32
    %127 = vector.broadcast %cst_58 : f32 to vector<32x1xf32>
    %128 = arith.addf %124, %127 : vector<32x1xf32>
    %129 = math.rsqrt %128 : vector<32x1xf32>
    %130 = vector.broadcast %129 : vector<32x1xf32> to vector<32x8xf32>
    %131 = arith.mulf %126, %130 : vector<32x8xf32>
    %c0_59 = arith.constant 0 : index
    %c0_60 = arith.constant 0 : index
    %132 = vector.load %arg16[%c0_59, %c0_60] : memref<1x8xf32, #tpu.memory_space<vmem>>, vector<1x8xf32>
    %133 = vector.broadcast %132 : vector<1x8xf32> to vector<32x8xf32>
    %134 = arith.mulf %131, %133 : vector<32x8xf32>
    %c0_61 = arith.constant 0 : index
    %c0_62 = arith.constant 0 : index
    %135 = vector.load %arg17[%c0_61, %c0_62] : memref<1x8xf32, #tpu.memory_space<vmem>>, vector<1x8xf32>
    %136 = vector.broadcast %135 : vector<1x8xf32> to vector<32x8xf32>
    %137 = arith.addf %134, %136 : vector<32x8xf32>
    %cst_63 = arith.constant 2.000000e-01 : f32
    %138 = vector.broadcast %cst_63 : f32 to vector<32x8xf32>
    %139 = arith.mulf %138, %137 : vector<32x8xf32>
    %140 = arith.maximumf %137, %139 : vector<32x8xf32>
    %c0_64 = arith.constant 0 : index
    %c0_65 = arith.constant 0 : index
    %141 = vector.load %arg18[%c0_64, %c0_65] : memref<32x8xf32, #tpu.memory_space<vmem>>, vector<32x8xf32>
    tpu.vector_store %arg18[%c0_64, %c0_65], %140 {strides = array<i32>} : memref<32x8xf32, #tpu.memory_space<vmem>>, vector<32x8xf32>,
    return
  }
  func.func @transform_0(%arg0: i32) -> (i32, i32) {
    %c0_i32 = arith.constant 0 : i32
    %c0_i32_0 = arith.constant 0 : i32
    return %arg0, %c0_i32 : i32, i32
  }
  func.func @transform_1(%arg0: i32) -> (i32, i32) {
    %c0_i32 = arith.constant 0 : i32
    %c0_i32_0 = arith.constant 0 : i32
    %c0_i32_1 = arith.constant 0 : i32
    return %c0_i32, %c0_i32_0 : i32, i32
  }
  func.func @transform_2(%arg0: i32) -> (i32, i32) {
    %c0_i32 = arith.constant 0 : i32
    %c0_i32_0 = arith.constant 0 : i32
    %c0_i32_1 = arith.constant 0 : i32
    return %c0_i32, %c0_i32_0 : i32, i32
  }
  func.func @transform_3(%arg0: i32) -> (i32, i32) {
    %c0_i32 = arith.constant 0 : i32
    %c0_i32_0 = arith.constant 0 : i32
    %c0_i32_1 = arith.constant 0 : i32
    return %c0_i32, %c0_i32_0 : i32, i32
  }
  func.func @transform_4(%arg0: i32) -> (i32, i32) {
    %c0_i32 = arith.constant 0 : i32
    %c0_i32_0 = arith.constant 0 : i32
    %c0_i32_1 = arith.constant 0 : i32
    return %c0_i32, %c0_i32_0 : i32, i32
  }
  func.func @transform_5(%arg0: i32) -> (i32, i32) {
    %c0_i32 = arith.constant 0 : i32
    %c0_i32_0 = arith.constant 0 : i32
    %c0_i32_1 = arith.constant 0 : i32
    return %c0_i32, %c0_i32_0 : i32, i32
  }
  func.func @transform_6(%arg0: i32) -> (i32, i32) {
    %c0_i32 = arith.constant 0 : i32
    %c0_i32_0 = arith.constant 0 : i32
    %c0_i32_1 = arith.constant 0 : i32
    return %c0_i32, %c0_i32_0 : i32, i32
  }
  func.func @transform_7(%arg0: i32) -> (i32, i32) {
    %c0_i32 = arith.constant 0 : i32
    %c0_i32_0 = arith.constant 0 : i32
    %c0_i32_1 = arith.constant 0 : i32
    return %c0_i32, %c0_i32_0 : i32, i32
  }
  func.func @transform_8(%arg0: i32) -> (i32, i32) {
    %c0_i32 = arith.constant 0 : i32
    %c0_i32_0 = arith.constant 0 : i32
    %c0_i32_1 = arith.constant 0 : i32
    return %c0_i32, %c0_i32_0 : i32, i32
  }
  func.func @transform_9(%arg0: i32) -> (i32, i32) {
    %c0_i32 = arith.constant 0 : i32
    %c0_i32_0 = arith.constant 0 : i32
    %c0_i32_1 = arith.constant 0 : i32
    return %c0_i32, %c0_i32_0 : i32, i32
  }
  func.func @transform_10(%arg0: i32) -> (i32, i32) {
    %c0_i32 = arith.constant 0 : i32
    %c0_i32_0 = arith.constant 0 : i32
    %c0_i32_1 = arith.constant 0 : i32
    return %c0_i32, %c0_i32_0 : i32, i32
  }
  func.func @transform_11(%arg0: i32) -> (i32, i32) {
    %c0_i32 = arith.constant 0 : i32
    %c0_i32_0 = arith.constant 0 : i32
    %c0_i32_1 = arith.constant 0 : i32
    return %c0_i32, %c0_i32_0 : i32, i32
  }
  func.func @transform_12(%arg0: i32) -> (i32, i32) {
    %c0_i32 = arith.constant 0 : i32
    %c0_i32_0 = arith.constant 0 : i32
    %c0_i32_1 = arith.constant 0 : i32
    return %c0_i32, %c0_i32_0 : i32, i32
  }
  func.func @transform_13(%arg0: i32) -> (i32, i32) {
    %c0_i32 = arith.constant 0 : i32
    %c0_i32_0 = arith.constant 0 : i32
    %c0_i32_1 = arith.constant 0 : i32
    return %c0_i32, %c0_i32_0 : i32, i32
  }
  func.func @transform_14(%arg0: i32) -> (i32, i32) {
    %c0_i32 = arith.constant 0 : i32
    %c0_i32_0 = arith.constant 0 : i32
    %c0_i32_1 = arith.constant 0 : i32
    return %c0_i32, %c0_i32_0 : i32, i32
  }
  func.func @transform_15(%arg0: i32) -> (i32, i32) {
    %c0_i32 = arith.constant 0 : i32
    %c0_i32_0 = arith.constant 0 : i32
    %c0_i32_1 = arith.constant 0 : i32
    return %c0_i32, %c0_i32_0 : i32, i32
  }
  func.func @transform_16(%arg0: i32) -> (i32, i32) {
    %c0_i32 = arith.constant 0 : i32
    %c0_i32_0 = arith.constant 0 : i32
    %c0_i32_1 = arith.constant 0 : i32
    return %c0_i32, %c0_i32_0 : i32, i32
  }
  func.func @transform_17(%arg0: i32) -> (i32, i32) {
    %c0_i32 = arith.constant 0 : i32
    %c0_i32_0 = arith.constant 0 : i32
    return %arg0, %c0_i32 : i32, i32
  }
}

</mosaic_0001>

<bundles_post_ra>
// kernel: discriminator_forward.1
= control target key start
LH: loop header
LB: loop body
LE: loop exit
PB: predicated region body
PF: predicated region fallthrough
CT: control target
= control target key end

     0   :  { %s2313_s24 = smov 0   ;;  %s2835_s0 = inlined_call_operand.vmem [shape: f32[64,64], index: 0, kind: input, shape index: {}]   ;;  %s2836_s1 = inlined_call_operand.vmem [shape: bf16[64,512], index: 1, kind: input, shape index: {}]   ;;  %s2837_s2 = inlined_call_operand.vmem [shape: f32[1,512], index: 2, kind: input, shape index: {}]   ;;  %s2838_s3 = inlined_call_operand.vmem [shape: f32[1,512], index: 3, kind: input, shape index: {}]   ;;  %s2839_s4 = inlined_call_operand.vmem [shape: f32[1,512], index: 4, kind: input, shape index: {}]   ;;  %s2840_s5 = inlined_call_operand.vmem [shape: bf16[512,128], index: 5, kind: input, shape index: {}]   ;;  %s2841_s6 = inlined_call_operand.vmem [shape: f32[1,128], index: 6, kind: input, shape index: {}]   ;;  %s2842_s7 = inlined_call_operand.vmem [shape: f32[1,128], index: 7, kind: input, shape index: {}]   ;;  %s2843_s8 = inlined_call_operand.vmem [shape: f32[1,128], index: 8, kind: input, shape index: {}]   ;;  %s2844_s9 = inlined_call_operand.vmem [shape: bf16[128,32], index: 9, kind: input, shape index: {}]   ;;  %s2845_s10 = inlined_call_operand.vmem [shape: f32[1,32], index: 10, kind: input, shape index: {}]   ;;  %s2846_s11 = inlined_call_operand.vmem [shape: f32[1,32], index: 11, kind: input, shape index: {}]   ;;  %s2847_s12 = inlined_call_operand.vmem [shape: f32[1,32], index: 12, kind: input, shape index: {}]   ;;  %s2848_s13 = inlined_call_operand.vmem [shape: bf16[32,8], index: 13, kind: input, shape index: {}]   ;;  %s2849_s14 = inlined_call_operand.vmem [shape: f32[1,8], index: 14, kind: input, shape index: {}]   ;;  %s2850_s15 = inlined_call_operand.vmem [shape: f32[1,8], index: 15, kind: input, shape index: {}]   ;;  %s2851_s16 = inlined_call_operand.vmem [shape: f32[1,8], index: 16, kind: input, shape index: {}]   ;;  %s2852_s17 = inlined_call_operand.vmem [shape: f32[64,8], index: 17, kind: output, shape index: {}]  }
   0x1   :  { %2855 = sst [smem:[#allocation3_spill]] %s2835_s0 }
   0x2   :  { %2856 = sst [smem:[#allocation4_spill]] %s2836_s1 }
   0x3 LB: > { %2857 = sst [smem:[#allocation2_spill]] %s2220_s24  ;;  %s1925_s25 = sadd.s32 4294967295, %s2220_s24   ;;  %s2220_s24 = sphi %s2313_s24, %s27_s24  }
   0x4   : > { %p1929_p0 = scmp.ge.s32.totalorder %s2220_s24, 1  ;;  %p488_p1 = scmp.lt.s32.totalorder %s2220_s24, 3 }
   0x6   : > { %p489_p2 = pnand %p1929_p0, %p488_p1 }
   0x7   : > { %s2858_s28 = sld [smem:[#allocation4_spill]] (!%p489_p2)  ;;  %s1930_s29 = sshll.u32 (!%p489_p2), %s1925_s25, 2  ;;  %v2222_v2 = vmov (!%p489_p2), 0   ;;  %vm677_vm0 = vcmask (!%p489_p2), 523264   ;;  %v577_v23 = vlaneseq (!%p489_p2)  ;;  %v575_v27 = vld [vmem:[%s2837_s2] sm:$0xf] (!%p489_p2) }
   0x8   : > { %492 = sbr.rel (%p489_p2) target bundleno = 1644 (0x66c), region = 88  ;;  %716 = vmatprep.mubr.bf16.mxu0 (!%p489_p2), %v2222_v2  ;;  %769 = vmatprep.mubr.bf16.mxu1 (!%p489_p2), %v2222_v2  ;;  %p541_p3 = scmp.lt.s32.totalorder (!%p489_p2), %s1930_s29, 7  ;;  %vm1593_vm1 = vcmask (!%p489_p2), 261120   ;;  %vm1769_vm2 = vcmask (!%p489_p2), 64512  }
   0x9   : > { %s2859_s1 = sld [smem:[#allocation3_spill]] (!%p489_p2)  ;;  %v578_v24 = vshrl.u32 (!%p489_p2), %v577_v23, 7 }
   0xb   : > { %v2377_v25 = vsub.s32 (!%p489_p2), 0, %v578_v24  ;;  %v2379_v26 = vsub.s32 (!%p489_p2), 2, %v578_v24  ;;  %v2384_v28 = vsub.s32 (!%p489_p2), 1, %v578_v24  ;;  %v2386_v29 = vsub.s32 (!%p489_p2), 3, %v578_v24 }
   0xd   : > { %v2116_v0 = vld [vmem:[%s2858_s28 + $0x4] ss:$16 sps:$4 sm:$0xff] (!%p489_p2)   ;;  %v2118_v1 = vld [vmem:[%s2858_s28 + $0xc] ss:$16 sps:$4 sm:$0xff] (!%p489_p2)   ;;  %v2120_v3 = vld [vmem:[%s2858_s28] ss:$16 sps:$4 sm:$0xff] (!%p489_p2)   ;;  %v580_v30 = vrot.slane (!%p489_p2), %v575_v27, %v2377_v25  ;;  %v588_v31 = vrot.slane (!%p489_p2), %v575_v27, %v2379_v26  ;;  %v584_v32 = vrot.slane (!%p489_p2), %v575_v27, %v2384_v28  ;;  %v2392_v33 = vrot.slane (!%p489_p2), %v575_v27, %v2386_v29 }
   0xe   : > { %684 = vmatprep.subr.bf16.mxu0 (!%p489_p2), %v2116_v0  ;;  %v2121_v4 = vld [vmem:[%s2858_s28 + $0x8] ss:$16 sps:$4 sm:$0xff] (!%p489_p2)   ;;  %737 = vmatprep.subr.bf16.mxu1 (!%p489_p2), %v2118_v1  ;;  %v2122_v5 = vld [vmem:[%s2858_s28 + $0x24] ss:$16 sps:$4 sm:$0xff] (!%p489_p2)   ;;  %v2124_v6 = vld [vmem:[%s2858_s28 + $0x2c] ss:$16 sps:$4 sm:$0xff] (!%p489_p2)  }
   0xf   : > { %s2862_s29 = smov (!%p541_p3, %s1930_s29), 7  ;;  %685 = vmatpush1.bf16.msra.mxu0 %v2120_v3  ;;  %738 = vmatpush1.bf16.msra.mxu1 %v2121_v4  ;;  %v2126_v7 = vld [vmem:[%s2858_s28 + $0x20] ss:$16 sps:$4 sm:$0xff]   ;;  %v2127_v8 = vld [vmem:[%s2858_s28 + $0x28] ss:$16 sps:$4 sm:$0xff]  }
  0x10   : > { %686 = vmatprep.subr.bf16.mxu0 %v2122_v5  ;;  %s1931_s18 = sshll.u32 %s2862_s29, 3  ;;  %739 = vmatprep.subr.bf16.mxu1 %v2124_v6  ;;  %v2128_v9 = vld [vmem:[%s2858_s28 + $0x44] ss:$16 sps:$4 sm:$0xff]   ;;  %v2130_v10 = vld [vmem:[%s2858_s28 + $0x4c] ss:$16 sps:$4 sm:$0xff]  }
  0x11   : > { %v2132_v11 = vld [vmem:[%s2858_s28 + $0x40] ss:$16 sps:$4 sm:$0xff]   ;;  %v2133_v12 = vld [vmem:[%s2858_s28 + $0x48] ss:$16 sps:$4 sm:$0xff]   ;;  %v2134_v13 = vld [vmem:[%s2858_s28 + $0x64] ss:$16 sps:$4 sm:$0xff]   ;;  %s544_s20 = scalar_lea.vmem %s2859_s1, %s1931_s18  ;;  %s550_s0 = scalar_lea.vmem %s2852_s17, %s1931_s18 }
  0x12   : > { %v2136_v14 = vld [vmem:[%s2858_s28 + $0x6c] ss:$16 sps:$4 sm:$0xff]   ;;  %v2138_v15 = vld [vmem:[%s2858_s28 + $0x60] ss:$16 sps:$4 sm:$0xff]   ;;  %v2139_v16 = vld [vmem:[%s2858_s28 + $0x68] ss:$16 sps:$4 sm:$0xff]  }
  0x13   : > { %687 = vmatpush1.bf16.msra.mxu0 %v2126_v7  ;;  %740 = vmatpush1.bf16.msra.mxu1 %v2127_v8  ;;  %v553_v17 = vld [vmem:[%s544_s20] sm:$0xff]  ;;  %v554_v18 = vld [vmem:[%s544_s20 + $0x8] sm:$0xff]  ;;  %v555_v20 = vld [vmem:[%s544_s20 + $0x10] sm:$0xff] }
  0x14   : > { %688 = vmatprep.subr.bf16.mxu0 %v2128_v9  ;;  %741 = vmatprep.subr.bf16.mxu1 %v2130_v10  ;;  %v557_v19 = vpack.c.bf16 %v554_v18, %v553_v17  ;;  %v556_v21 = vld [vmem:[%s544_s20 + $0x18] sm:$0xff] }
  0x15   : > { %v558_v22 = vpack.c.bf16 %v556_v21, %v555_v20 }
  0x17   : > { %689 = vmatpush1.bf16.msra.mxu0 %v2132_v11  ;;  %742 = vmatpush1.bf16.msra.mxu1 %v2133_v12 }
  0x18   : > { %690 = vmatprep.subr.bf16.mxu0 %v2134_v13  ;;  %743 = vmatprep.subr.bf16.mxu1 %v2136_v14 }
  0x1b   : > { %691 = vmatpush1.bf16.msra.mxu0 %v2138_v15  ;;  %744 = vmatpush1.bf16.msra.mxu1 %v2139_v16 }
  0x1e   : > { %1950 = vmatmul.mubr.msk.bf16.vlgmr.msra.gmra.mrb[0].mxu0 %vm677_vm0, %v557_v19  ;;  %1952 = vmatmul.mubr.msk.bf16.vlgmr.msra.gmra.mrb[0].mxu1 %vm677_vm0, %v557_v19 }
  0x1f   : > { %726 = vmatprep.mubr.bf16.mxu0 %v2222_v2  ;;  %779 = vmatprep.mubr.bf16.mxu1 %v2222_v2 }
  0x26   : > { %1951 = vmatmul.mubr.msk.bf16.gmra.mrb[4].mxu0 %vm677_vm0, %v558_v22  ;;  %1953 = vmatmul.mubr.msk.bf16.gmra.mrb[4].mxu1 %vm677_vm0, %v558_v22 }
  0xf1   : > { %v718_v34 = vpop.f32.mrb[0].mxu0  ;;  %v771_v35 = vpop.f32.mrb[0].mxu1 }
  0xf2   : > { %v2394_v36 = vadd.f32 %v718_v34, %v580_v30  ;;  %v2396_v37 = vadd.f32 %v771_v35, %v588_v31  ;;  %v720_v38 = vpop.f32.mrb[1].mxu0  ;;  %v773_v39 = vpop.f32.mrb[1].mxu1 }
  0xf3   : > { %v2398_v40 = vadd.f32 %v720_v38, %v584_v32  ;;  %v722_v41 = vpop.f32.mrb[2].mxu0  ;;  %v775_v42 = vpop.f32.mrb[2].mxu1  ;;  %v2403_v44 = vadd.f32 %v773_v39, %v2392_v33 }
  0xf4   : > { %v815_v43 = vmul.f32 %v2394_v36, %v2394_v36  ;;  %v2405_v45 = vadd.f32 %v722_v41, %v580_v30  ;;  %v724_v46 = vpop.f32.mrb[3].mxu0  ;;  %v777_v47 = vpop.f32.mrb[3].mxu1  ;;  %v817_v51 = vmul.f32 %v2396_v37, %v2396_v37  ;;  %v2417_v53 = vadd.f32 %v775_v42, %v588_v31 }
  0xf5   : > { %v816_v48 = vmul.f32 %v2398_v40, %v2398_v40  ;;  %v2409_v49 = vadd.f32 %v724_v46, %v584_v32  ;;  %v790_v50 = vadd.f32 %v2398_v40, %v2394_v36  ;;  %v2425_v58 = vadd.f32 %v777_v47, %v2392_v33 }
  0xf6   : > { %v819_v52 = vmul.f32 %v2405_v45, %v2405_v45  ;;  %v818_v62 = vmul.f32 %v2403_v44, %v2403_v44  ;;  %v821_v6 = vmul.f32 %v2417_v53, %v2417_v53 }
  0xf7   : > { %v795_v54 = vadd.f32 %v2409_v49, %v2405_v45  ;;  %v820_v55 = vmul.f32 %v2409_v49, %v2409_v49  ;;  %v791_v56 = vadd.f32 %v790_v50, %v2396_v37  ;;  %v831_v57 = vadd.f32 %v816_v48, %v815_v43 }
  0xf8   : > { %v822_v16 = vmul.f32 %v2425_v58, %v2425_v58 }
  0xf9   : > { %v728_v59 = vpop.f32.mrb[4].mxu0  ;;  %v781_v60 = vpop.f32.mrb[4].mxu1  ;;  %v792_v61 = vadd.f32 %v791_v56, %v2403_v44  ;;  %v832_v63 = vadd.f32 %v831_v57, %v817_v51  ;;  %v796_v0 = vadd.f32 %v795_v54, %v2417_v53  ;;  %v836_v5 = vadd.f32 %v820_v55, %v819_v52  ;;  %v2140_v52 = vld [vmem:[%s2840_s5 + $0x40] sm:$0xff]   ;;  %v2144_v57 = vld [vmem:[%s2840_s5 + $0x48] sm:$0xff]  }
  0xfa   : > { %v2431_v1 = vadd.f32 %v728_v59, %v580_v30  ;;  %v2433_v2 = vadd.f32 %v781_v60, %v588_v31  ;;  %v730_v3 = vpop.f32.mrb[5].mxu0  ;;  %v783_v4 = vpop.f32.mrb[5].mxu1  ;;  %v2141_v54 = vld [vmem:[%s2840_s5 + $0xc0] sm:$0xff]   ;;  %2009 = vmatprep.subr.bf16.mxu0 %v2140_v52  ;;  %v2145_v59 = vld [vmem:[%s2840_s5 + $0xc8] sm:$0xff]  }
  0xfb   : > { %v2437_v7 = vadd.f32 %v730_v3, %v584_v32  ;;  %v732_v8 = vpop.f32.mrb[6].mxu0  ;;  %v785_v9 = vpop.f32.mrb[6].mxu1  ;;  %793 = vadd.xlane.f32.xlu0 %v792_v61  ;;  %v833_v10 = vadd.f32 %v832_v63, %v818_v62  ;;  %v797_v15 = vadd.f32 %v796_v0, %v2425_v58  ;;  %v2455_v21 = vadd.f32 %v783_v4, %v2392_v33  ;;  %v2142_v55 = vld [vmem:[%s2840_s5] sm:$0xff]   ;;  %v2146_v60 = vld [vmem:[%s2840_s5 + $0x8] sm:$0xff]   ;;  %v2148_v62 = vld [vmem:[%s2840_s5 + $0x50] sm:$0xff]  }
  0xfc   : > { %v823_v11 = vmul.f32 %v2431_v1, %v2431_v1  ;;  %v2441_v12 = vadd.f32 %v732_v8, %v580_v30  ;;  %v734_v13 = vpop.f32.mrb[7].mxu0  ;;  %v787_v14 = vpop.f32.mrb[7].mxu1  ;;  %v825_v17 = vmul.f32 %v2433_v2, %v2433_v2  ;;  %v2459_v23 = vadd.f32 %v785_v9, %v588_v31  ;;  %v2143_v56 = vld [vmem:[%s2840_s5 + $0x80] sm:$0xff]   ;;  %2037 = vmatprep.subr.bf16.mxu1 %v2141_v54  ;;  %v2147_v61 = vld [vmem:[%s2840_s5 + $0x88] sm:$0xff]   ;;  %v2149_v63 = vld [vmem:[%s2840_s5 + $0xd0] sm:$0xff]  }
  0xfd   : > { %v800_v18 = vadd.f32 %v2437_v7, %v2431_v1  ;;  %v824_v19 = vmul.f32 %v2437_v7, %v2437_v7  ;;  %v2452_v20 = vadd.f32 %v734_v13, %v584_v32  ;;  %834 = vadd.xlane.f32.xlu1 %v833_v10  ;;  %v837_v24 = vadd.f32 %v836_v5, %v821_v6  ;;  %v2150_v0 = vld [vmem:[%s2840_s5 + $0x10] sm:$0xff]   ;;  %v2152_v4 = vld [vmem:[%s2840_s5 + $0x58] sm:$0xff]   ;;  %v2156_v9 = vld [vmem:[%s2840_s5 + $0x60] sm:$0xff]  }
  0xfe   : > { %v827_v22 = vmul.f32 %v2441_v12, %v2441_v12  ;;  %v2467_v35 = vadd.f32 %v787_v14, %v2392_v33  ;;  %v829_v43 = vmul.f32 %v2459_v23, %v2459_v23  ;;  %v826_v47 = vmul.f32 %v2455_v21, %v2455_v21  ;;  %2010 = vmatpush3.bf16.msra.mxu0 %v2142_v55  ;;  %v2151_v3 = vld [vmem:[%s2840_s5 + $0x90] sm:$0xff]   ;;  %v2153_v5 = vld [vmem:[%s2840_s5 + $0xd8] sm:$0xff]   ;;  %v2157_v10 = vld [vmem:[%s2840_s5 + $0xe0] sm:$0xff]  }
  0xff   : > { %v805_v27 = vadd.f32 %v2452_v20, %v2441_v12  ;;  %v828_v30 = vmul.f32 %v2452_v20, %v2452_v20  ;;  %798 = vadd.xlane.f32.xlu0 %v797_v15  ;;  %v801_v32 = vadd.f32 %v800_v18, %v2433_v2  ;;  %v841_v34 = vadd.f32 %v824_v19, %v823_v11  ;;  %v2154_v6 = vld [vmem:[%s2840_s5 + $0x18] sm:$0xff]   ;;  %v2158_v11 = vld [vmem:[%s2840_s5 + $0x20] sm:$0xff]   ;;  %v2160_v14 = vld [vmem:[%s2840_s5 + $0x68] sm:$0xff]  }
 0x100   : > { %v838_v38 = vadd.f32 %v837_v24, %v822_v16  ;;  %v830_v50 = vmul.f32 %v2467_v35, %v2467_v35  ;;  %2038 = vmatpush3.bf16.msra.mxu1 %v2143_v56  ;;  %2011 = vmatprep.subr.bf16.mxu0 %v2144_v57  ;;  %v2155_v8 = vld [vmem:[%s2840_s5 + $0x98] sm:$0xff]   ;;  %v2159_v13 = vld [vmem:[%s2840_s5 + $0xa0] sm:$0xff]   ;;  %v2161_v15 = vld [vmem:[%s2840_s5 + $0xe8] sm:$0xff]  }
 0x101   : > { %v802_v39 = vadd.f32 %v801_v32, %v2455_v21  ;;  %v806_v31 = vadd.f32 %v805_v27, %v2459_v23  ;;  %v842_v41 = vadd.f32 %v841_v34, %v825_v17  ;;  %v846_v42 = vadd.f32 %v828_v30, %v827_v22  ;;  %2039 = vmatprep.subr.bf16.mxu1 %v2145_v59  ;;  %v2162_v16 = vld [vmem:[%s2840_s5 + $0x28] sm:$0xff]   ;;  %v2164_v18 = vld [vmem:[%s2840_s5 + $0x70] sm:$0xff]   ;;  %v2168_v27 = vld [vmem:[%s2840_s5 + $0x78] sm:$0xff]  }
 0x102   : > { %839 = vadd.xlane.f32.xlu1 %v838_v38  ;;  %2012 = vmatpush3.bf16.msra.mxu0 %v2146_v60  ;;  %v2163_v17 = vld [vmem:[%s2840_s5 + $0xa8] sm:$0xff]   ;;  %v2165_v19 = vld [vmem:[%s2840_s5 + $0xf0] sm:$0xff]   ;;  %v2169_v30 = vld [vmem:[%s2840_s5 + $0xf8] sm:$0xff]  }
 0x103   : > { %803 = vadd.xlane.f32.xlu0 %v802_v39  ;;  %v807_v46 = vadd.f32 %v806_v31, %v2467_v35  ;;  %v847_v48 = vadd.f32 %v846_v42, %v829_v43  ;;  %v843_v33 = vadd.f32 %v842_v41, %v826_v47  ;;  %2013 = vmatprep.subr.bf16.mxu0 %v2148_v62  ;;  %v2166_v22 = vld [vmem:[%s2840_s5 + $0x30] sm:$0xff]   ;;  %v2170_v32 = vld [vmem:[%s2840_s5 + $0x38] sm:$0xff]  }
 0x104   : > { %2040 = vmatpush3.bf16.msra.mxu1 %v2147_v61  ;;  %v2167_v24 = vld [vmem:[%s2840_s5 + $0xb0] sm:$0xff]   ;;  %v2171_v34 = vld [vmem:[%s2840_s5 + $0xb8] sm:$0xff]  }
 0x105   : > { %v848_v51 = vadd.f32 %v847_v48, %v830_v50  ;;  %2041 = vmatprep.subr.bf16.mxu1 %v2149_v63 }
 0x106   : > { %808 = vadd.xlane.f32.xlu1 %v807_v46  ;;  %2014 = vmatpush3.bf16.msra.mxu0 %v2150_v0  ;;  %v907_v0 = vld [vmem:[%s2838_s3] sm:$0xf] }
 0x107   : > { %844 = vadd.xlane.f32.xlu0 %v843_v33  ;;  %2015 = vmatprep.subr.bf16.mxu0 %v2152_v4 }
 0x108   : > { %2042 = vmatpush3.bf16.msra.mxu1 %v2151_v3  ;;  %v945_v3 = vld [vmem:[%s2839_s4] sm:$0xf] }
 0x109   : > { %2043 = vmatprep.subr.bf16.mxu1 %v2153_v5 }
 0x10a   : > { %849 = vadd.xlane.f32.xlu1 %v848_v51  ;;  %2016 = vmatpush3.bf16.msra.mxu0 %v2154_v6 }
 0x10b   : > { %2017 = vmatprep.subr.bf16.mxu0 %v2156_v9 }
 0x10c   : > { %2044 = vmatpush3.bf16.msra.mxu1 %v2155_v8 }
 0x10d   : > { %2045 = vmatprep.subr.bf16.mxu1 %v2157_v10  ;;  %v2593_v10 = vrot.slane %v907_v0, %v2377_v25 }
 0x10e   : > { %2018 = vmatpush3.bf16.msra.mxu0 %v2158_v11  ;;  %v2596_v11 = vrot.slane %v945_v3, %v2377_v25  ;;  %v2614_v25 = vrot.slane %v945_v3, %v2386_v29 }
 0x10f   : > { %2019 = vmatprep.subr.bf16.mxu0 %v2160_v14  ;;  %v2599_v14 = vrot.slane %v907_v0, %v2379_v26 }
 0x110   : > { %2046 = vmatpush3.bf16.msra.mxu1 %v2159_v13 }
 0x111   : > { %2047 = vmatprep.subr.bf16.mxu1 %v2161_v15  ;;  %v2602_v15 = vrot.slane %v945_v3, %v2379_v26 }
 0x112   : > { %2020 = vmatpush3.bf16.msra.mxu0 %v2162_v16  ;;  %v2605_v16 = vrot.slane %v907_v0, %v2384_v28 }
 0x113   : > { %2021 = vmatprep.subr.bf16.mxu0 %v2164_v18  ;;  %v2608_v18 = vrot.slane %v907_v0, %v2386_v29 }
 0x114   : > { %2048 = vmatpush3.bf16.msra.mxu1 %v2163_v17 }
 0x115   : > { %2049 = vmatprep.subr.bf16.mxu1 %v2165_v19 }
 0x116   : > { %2022 = vmatpush3.bf16.msra.mxu0 %v2166_v22  ;;  %v2611_v22 = vrot.slane %v945_v3, %v2384_v28 }
 0x117   : > { %2023 = vmatprep.subr.bf16.mxu0 %v2168_v27 }
 0x118   : > { %2050 = vmatpush3.bf16.msra.mxu1 %v2167_v24 }
 0x119   : > { %2051 = vmatprep.subr.bf16.mxu1 %v2169_v30 }
 0x11a   : > { %2024 = vmatpush3.bf16.msra.mxu0 %v2170_v32 }
 0x11c   : > { %2052 = vmatpush3.bf16.msra.mxu1 %v2171_v34 }
 0x188   : > { %v794_v38 = vpop.xlane.xlu0 %793 }
 0x189   : > { %v811_v39 = vmul.f32 0.001953125, %v794_v38 }
 0x18a   : > { %v835_v31 = vpop.xlane.xlu1 %834 }
 0x18b   : > { %v851_v41 = vmul.f32 0.001953125, %v835_v31  ;;  %v855_v42 = vmul.f32 %v811_v39, %v811_v39  ;;  %v867_v24 = vsub.f32 %v2394_v36, %v811_v39  ;;  %v868_v27 = vsub.f32 %v2398_v40, %v811_v39 }
 0x18c   : > { %v799_v43 = vpop.xlane.xlu0 %798  ;;  %v869_v26 = vsub.f32 %v2396_v37, %v811_v39  ;;  %v870_v32 = vsub.f32 %v2403_v44, %v811_v39 }
 0x18d   : > { %v2574_v46 = vmul.f32 0.001953125, %v799_v43  ;;  %v859_v47 = vsub.f32 %v851_v41, %v855_v42 }
 0x18f   : > { %v840_v48 = vpop.xlane.xlu1 %839  ;;  %v863_v33 = vmax.f32 %v859_v47, 0.0  ;;  %v856_v51 = vmul.f32 %v2574_v46, %v2574_v46  ;;  %v871_v34 = vsub.f32 %v2405_v45, %v2574_v46  ;;  %v872_v38 = vsub.f32 %v2409_v49, %v2574_v46 }
 0x190   : > { %v852_v50 = vmul.f32 0.001953125, %v840_v48  ;;  %v804_v52 = vpop.xlane.xlu0 %803  ;;  %v873_v29 = vsub.f32 %v2417_v53, %v2574_v46  ;;  %v874_v36 = vsub.f32 %v2425_v58, %v2574_v46 }
 0x191   : > { %v2578_v54 = vmul.f32 0.001953125, %v804_v52  ;;  %v883_v55 = vadd.f32 1e-05, %v863_v33 }
 0x192   : > { %v860_v56 = vsub.f32 %v852_v50, %v856_v51 }
 0x193   : > { %v809_v57 = vpop.xlane.xlu1 %808  ;;  %2182 = vrsqrt.f32 %v883_v55  ;;  %v857_v62 = vmul.f32 %v2578_v54, %v2578_v54  ;;  %v875_v37 = vsub.f32 %v2431_v1, %v2578_v54  ;;  %v876_v45 = vsub.f32 %v2437_v7, %v2578_v54 }
 0x194   : > { %v864_v59 = vmax.f32 %v860_v56, 0.0  ;;  %v2580_v60 = vmul.f32 0.001953125, %v809_v57  ;;  %v845_v61 = vpop.xlane.xlu0 %844  ;;  %v877_v49 = vsub.f32 %v2433_v2, %v2578_v54  ;;  %v878_v53 = vsub.f32 %v2455_v21, %v2578_v54 }
 0x195   : > { %v853_v63 = vmul.f32 0.001953125, %v845_v61 }
 0x196   : > { %v884_v4 = vadd.f32 1e-05, %v864_v59  ;;  %v858_v8 = vmul.f32 %v2580_v60, %v2580_v60  ;;  %v879_v47 = vsub.f32 %v2441_v12, %v2580_v60  ;;  %v880_v7 = vsub.f32 %v2452_v20, %v2580_v60 }
 0x197   : > { %v861_v5 = vsub.f32 %v853_v63, %v857_v62  ;;  %v850_v6 = vpop.xlane.xlu1 %849  ;;  %v881_v2 = vsub.f32 %v2459_v23, %v2580_v60  ;;  %v882_v21 = vsub.f32 %v2467_v35, %v2580_v60 }
 0x198   : > { %2184 = vrsqrt.f32 %v884_v4  ;;  %v854_v9 = vmul.f32 0.001953125, %v850_v6 }
 0x199   : > { %v865_v13 = vmax.f32 %v861_v5, 0.0 }
 0x19a   : > { %v862_v17 = vsub.f32 %v854_v9, %v858_v8 }
 0x19b   : > { %v885_v19 = vadd.f32 1e-05, %v865_v13 }
 0x19c   : > { %v866_v30 = vmax.f32 %v862_v17, 0.0 }
 0x19d   : > { %2186 = vrsqrt.f32 %v885_v19  ;;  %v2183_v28 = vpop.eup %2182 }
 0x19e   : > { %v886_v40 = vadd.f32 1e-05, %v866_v30  ;;  %v892_v31 = vmul.f32 %v2183_v28, %v868_v27  ;;  %v894_v44 = vmul.f32 %v2183_v28, %v870_v32  ;;  %v891_v39 = vmul.f32 %v2183_v28, %v867_v24 }
 0x19f   : > { %v893_v41 = vmul.f32 %v2183_v28, %v869_v26 }
 0x1a0   : > { %2188 = vrsqrt.f32 %v886_v40  ;;  %v930_v58 = vmul.f32 %v2605_v16, %v892_v31  ;;  %v932_v42 = vmul.f32 %v2608_v18, %v894_v44  ;;  %v929_v1 = vmul.f32 %v2593_v10, %v891_v39 }
 0x1a1   : > { %v931_v43 = vmul.f32 %v2599_v14, %v893_v41 }
 0x1a2   : > { %v2185_v46 = vpop.eup %2184  ;;  %v968_v33 = vadd.f32 %v2611_v22, %v930_v58  ;;  %v970_v51 = vadd.f32 %v2614_v25, %v932_v42  ;;  %v967_v54 = vadd.f32 %v2596_v11, %v929_v1 }
 0x1a3   : > { %v896_v48 = vmul.f32 %v2185_v46, %v872_v38  ;;  %v898_v50 = vmul.f32 %v2185_v46, %v874_v36  ;;  %v895_v52 = vmul.f32 %v2185_v46, %v871_v34  ;;  %v897_v55 = vmul.f32 %v2185_v46, %v873_v29 }
 0x1a4   : > { %v969_v12 = vadd.f32 %v2602_v15, %v931_v43  ;;  %v984_v56 = vmul.f32 0.2, %v968_v33  ;;  %v986_v57 = vmul.f32 0.2, %v970_v51  ;;  %v983_v59 = vmul.f32 0.2, %v967_v54 }
 0x1a5   : > { %v934_v20 = vmul.f32 %v2605_v16, %v896_v48  ;;  %v936_v23 = vmul.f32 %v2608_v18, %v898_v50  ;;  %v933_v35 = vmul.f32 %v2593_v10, %v895_v52  ;;  %v935_v60 = vmul.f32 %v2599_v14, %v897_v55 }
 0x1a6   : > { %v985_v61 = vmul.f32 0.2, %v969_v12  ;;  %v1000_v0 = vmax.f32 %v968_v33, %v984_v56  ;;  %v1002_v4 = vmax.f32 %v970_v51, %v986_v57  ;;  %v999_v6 = vmax.f32 %v967_v54, %v983_v59 }
 0x1a7   : > { %v2187_v62 = vpop.eup %2186  ;;  %v972_v63 = vadd.f32 %v2611_v22, %v934_v20  ;;  %v974_v3 = vadd.f32 %v2614_v25, %v936_v23  ;;  %v971_v5 = vadd.f32 %v2596_v11, %v933_v35  ;;  %v973_v8 = vadd.f32 %v2602_v15, %v935_v60 }
 0x1a8   : > { %v1001_v9 = vmax.f32 %v969_v12, %v985_v61  ;;  %v900_v19 = vmul.f32 %v2187_v62, %v876_v45  ;;  %v902_v24 = vmul.f32 %v2187_v62, %v878_v53  ;;  %v899_v32 = vmul.f32 %v2187_v62, %v875_v37 }
 0x1a9   : > { %v988_v13 = vmul.f32 0.2, %v972_v63  ;;  %v990_v17 = vmul.f32 0.2, %v974_v3  ;;  %v987_v26 = vmul.f32 0.2, %v971_v5  ;;  %v901_v34 = vmul.f32 %v2187_v62, %v877_v49 }
 0x1aa   : > { %v2189_v27 = vpop.eup %2188  ;;  %v989_v30 = vmul.f32 0.2, %v973_v8  ;;  %v938_v36 = vmul.f32 %v2605_v16, %v900_v19  ;;  %v940_v39 = vmul.f32 %v2608_v18, %v902_v24 }
 0x1ab   : > { %v1004_v38 = vmax.f32 %v972_v63, %v988_v13  ;;  %v1006_v28 = vmax.f32 %v974_v3, %v990_v17  ;;  %v904_v29 = vmul.f32 %v2189_v27, %v880_v7  ;;  %v1003_v40 = vmax.f32 %v971_v5, %v987_v26 }
 0x1ac   : > { %v1005_v31 = vmax.f32 %v973_v8, %v989_v30  ;;  %v906_v44 = vmul.f32 %v2189_v27, %v882_v21  ;;  %v976_v53 = vadd.f32 %v2611_v22, %v938_v36  ;;  %v978_v49 = vadd.f32 %v2614_v25, %v940_v39 }
 0x1ad   : > { %v1016_v41 = vpack.c.bf16 %v1004_v38, %v1000_v0  ;;  %v1018_v58 = vpack.c.bf16 %v1006_v28, %v1002_v4  ;;  %v942_v45 = vmul.f32 %v2605_v16, %v904_v29  ;;  %v1015_v42 = vpack.c.bf16 %v1003_v40, %v999_v6 }
 0x1ae   : > { %v1017_v1 = vpack.c.bf16 %v1005_v31, %v1001_v9  ;;  %v944_v37 = vmul.f32 %v2608_v18, %v906_v44  ;;  %v992_v46 = vmul.f32 0.2, %v976_v53  ;;  %v903_v7 = vmul.f32 %v2189_v27, %v879_v47 }
 0x1af   : > { %1318 = vmatprep.mubr.bf16.mxu0 %v1016_v41  ;;  %1367 = vmatprep.mubr.bf16.mxu1 %v1018_v58  ;;  %v980_v43 = vadd.f32 %v2611_v22, %v942_v45  ;;  %v937_v21 = vmul.f32 %v2593_v10, %v899_v32  ;;  %v994_v48 = vmul.f32 0.2, %v978_v49  ;;  %v905_v33 = vmul.f32 %v2189_v27, %v881_v2 }
 0x1b0   : > { %1319 = vmatmul.mubr.bf16.vlgmr.msra.gmra.mrb[8].mxu0 %v1015_v42  ;;  %1368 = vmatmul.mubr.bf16.vlgmr.msra.gmra.mrb[8].mxu1 %v1017_v1  ;;  %v982_v16 = vadd.f32 %v2614_v25, %v944_v37  ;;  %v939_v50 = vmul.f32 %v2599_v14, %v901_v34  ;;  %v941_v18 = vmul.f32 %v2593_v10, %v903_v7 }
 0x1b1   : > { %v996_v51 = vmul.f32 0.2, %v980_v43  ;;  %v975_v52 = vadd.f32 %v2596_v11, %v937_v21  ;;  %v943_v22 = vmul.f32 %v2599_v14, %v905_v33  ;;  %v1008_v55 = vmax.f32 %v976_v53, %v992_v46  ;;  %v2173_v33 = vld [vmem:[%s2844_s9 + $0x8] sm:$0xff]  }
 0x1b2   : > { %v998_v54 = vmul.f32 0.2, %v982_v16  ;;  %v977_v47 = vadd.f32 %v2602_v15, %v939_v50  ;;  %v979_v20 = vadd.f32 %v2596_v11, %v941_v18  ;;  %v1010_v25 = vmax.f32 %v978_v49, %v994_v48  ;;  %v2172_v48 = vld [vmem:[%s2844_s9] sm:$0xff]   ;;  %v2174_v50 = vld [vmem:[%s2844_s9 + $0x10] sm:$0xff]  }
 0x1b3   : > { %v1012_v12 = vmax.f32 %v980_v43, %v996_v51  ;;  %v991_v56 = vmul.f32 0.2, %v975_v52  ;;  %v981_v2 = vadd.f32 %v2602_v15, %v943_v22  ;;  %v1954_v15 = vld [vmem:[%s2841_s6] ss:$0 sm:$0xff]  ;;  %2079 = vmatprep.subr.bf16.mxu0 %v2172_v48  ;;  %v2175_v51 = vld [vmem:[%s2844_s9 + $0x18] sm:$0xff]  }
 0x1b4   : > { %v1014_v23 = vmax.f32 %v982_v16, %v998_v54  ;;  %v993_v57 = vmul.f32 0.2, %v977_v47  ;;  %v995_v59 = vmul.f32 0.2, %v979_v20  ;;  %2080 = vmatpush3.bf16.msra.mxu0 %v2172_v48  ;;  %v2176_v18 = vld [vmem:[%s2844_s9 + $0x20] sm:$0xff]   ;;  %v2178_v54 = vld [vmem:[%s2844_s9 + $0x30] sm:$0xff]  }
 0x1b5   : > { %v1020_v35 = vpack.c.bf16 %v1012_v12, %v1008_v55  ;;  %v997_v60 = vmul.f32 0.2, %v981_v2  ;;  %v1007_v61 = vmax.f32 %v975_v52, %v991_v56  ;;  %2081 = vmatprep.subr.bf16.mxu0 %v2173_v33  ;;  %v2177_v52 = vld [vmem:[%s2844_s9 + $0x28] sm:$0xff]   ;;  %v2179_v22 = vld [vmem:[%s2844_s9 + $0x38] sm:$0xff]  }
 0x1b6   : > { %v1022_v10 = vpack.c.bf16 %v1014_v23, %v1010_v25  ;;  %v1011_v62 = vmax.f32 %v979_v20, %v995_v59  ;;  %v1009_v14 = vmax.f32 %v977_v47, %v993_v57 }
 0x1b7   : > { %1326 = vmatprep.mubr.bf16.mxu0 %v1020_v35  ;;  %v1013_v63 = vmax.f32 %v981_v2, %v997_v60 }
 0x1b8   : > { %1375 = vmatprep.mubr.bf16.mxu1 %v1022_v10  ;;  %v1019_v0 = vpack.c.bf16 %v1011_v62, %v1007_v61  ;;  %2082 = vmatpush3.bf16.msra.mxu0 %v2173_v33 }
 0x1b9   : > { %v1021_v3 = vpack.c.bf16 %v1013_v63, %v1009_v14  ;;  %2083 = vmatprep.subr.bf16.mxu0 %v2174_v50 }
 0x1ba   : > { %1327 = vmatmul.mubr.bf16.gmra.mrb[12].mxu0 %v1019_v0 }
 0x1bb   : > { %1376 = vmatmul.mubr.bf16.gmra.mrb[12].mxu1 %v1021_v3 }
 0x1bc   : > { %2084 = vmatpush3.bf16.msra.mxu0 %v2174_v50 }
 0x1bd   : > { %2085 = vmatprep.subr.bf16.mxu0 %v2175_v51 }
 0x1c0   : > { %2086 = vmatpush3.bf16.msra.mxu0 %v2175_v51 }
 0x1c1   : > { %2087 = vmatprep.subr.bf16.mxu0 %v2176_v18 }
 0x1c4   : > { %2088 = vmatpush3.bf16.msra.mxu0 %v2176_v18 }
 0x1c5   : > { %2089 = vmatprep.subr.bf16.mxu0 %v2177_v52 }
 0x1c8   : > { %2090 = vmatpush3.bf16.msra.mxu0 %v2177_v52 }
 0x1c9   : > { %2091 = vmatprep.subr.bf16.mxu0 %v2178_v54 }
 0x1cc   : > { %2092 = vmatpush3.bf16.msra.mxu0 %v2178_v54 }
 0x1cd   : > { %2093 = vmatprep.subr.bf16.mxu0 %v2179_v22 }
 0x1d0   : > { %2094 = vmatpush3.bf16.msra.mxu0 %v2179_v22 }
 0x283   : > { %v2025_v11 = vpop.f32.mrb[8].mxu0  ;;  %v2053_v4 = vpop.f32.mrb[8].mxu1 }
 0x284   : > { %v2026_v5 = vpop.f32.mrb[9].mxu0  ;;  %v2054_v6 = vpop.f32.mrb[9].mxu1 }
 0x285   : > { %v2027_v8 = vadd.f32 %v2026_v5, %v2025_v11  ;;  %v2055_v9 = vadd.f32 %v2054_v6, %v2053_v4  ;;  %v2028_v13 = vpop.f32.mrb[10].mxu0  ;;  %v2056_v17 = vpop.f32.mrb[10].mxu1 }
 0x286   : > { %v2029_v19 = vpop.f32.mrb[11].mxu0  ;;  %v2057_v24 = vpop.f32.mrb[11].mxu1 }
 0x287   : > { %v1321_v27 = vadd.f32 %v2027_v8, %v1954_v15  ;;  %v2030_v26 = vadd.f32 %v2029_v19, %v2028_v13  ;;  %v2058_v30 = vadd.f32 %v2057_v24, %v2056_v17 }
 0x289   : > { %v2679_v32 = vadd.f32 %v2055_v9, %v1321_v27  ;;  %v1324_v34 = vadd.f32 %v2030_v26, %v1954_v15 }
 0x28b   : > { %v2681_v38 = vadd.f32 %v2058_v30, %v1324_v34  ;;  %1384 = vadd.xlane.f32.xlu0 %v2679_v32  ;;  %v1397_v28 = vmul.f32 %v2679_v32, %v2679_v32  ;;  %v1987_v34 = vld [vmem:[%s2842_s7] ss:$0 sm:$0xff] }
 0x28d   : > { %1386 = vadd.xlane.f32.xlu1 %v2681_v38  ;;  %v2031_v29 = vpop.f32.mrb[12].mxu0  ;;  %v1398_v31 = vmul.f32 %v2681_v38, %v2681_v38 }
 0x28e   : > { %v2059_v36 = vpop.f32.mrb[12].mxu1  ;;  %v2032_v40 = vpop.f32.mrb[13].mxu0 }
 0x28f   : > { %1401 = vadd.xlane.f32.xlu0 %v1397_v28  ;;  %v2033_v44 = vadd.f32 %v2032_v40, %v2031_v29  ;;  %v2060_v39 = vpop.f32.mrb[13].mxu1  ;;  %v2034_v41 = vpop.f32.mrb[14].mxu0 }
 0x290   : > { %v2061_v58 = vadd.f32 %v2060_v39, %v2059_v36  ;;  %v2062_v45 = vpop.f32.mrb[14].mxu1  ;;  %v2035_v53 = vpop.f32.mrb[15].mxu0 }
 0x291   : > { %1403 = vadd.xlane.f32.xlu1 %v1398_v31  ;;  %v1329_v42 = vadd.f32 %v2033_v44, %v1954_v15  ;;  %v2036_v1 = vadd.f32 %v2035_v53, %v2034_v41  ;;  %v2063_v37 = vpop.f32.mrb[15].mxu1  ;;  %v1988_v31 = vld [vmem:[%s2843_s8] ss:$0 sm:$0xff] }
 0x292   : > { %v2064_v49 = vadd.f32 %v2063_v37, %v2062_v45 }
 0x293   : > { %v2689_v43 = vadd.f32 %v2061_v58, %v1329_v42  ;;  %v1332_v46 = vadd.f32 %v2036_v1, %v1954_v15 }
 0x295   : > { %v2691_v7 = vadd.f32 %v2064_v49, %v1332_v46  ;;  %1388 = vadd.xlane.f32.xlu0 %v2689_v43  ;;  %v1399_v21 = vmul.f32 %v2689_v43, %v2689_v43 }
 0x297   : > { %1390 = vadd.xlane.f32.xlu1 %v2691_v7  ;;  %v1400_v16 = vmul.f32 %v2691_v7, %v2691_v7 }
 0x299   : > { %1405 = vadd.xlane.f32.xlu0 %v1399_v21 }
 0x29b   : > { %1407 = vadd.xlane.f32.xlu1 %v1400_v16 }
 0x318   : > { %v1385_v47 = vpop.xlane.xlu0 %1384 }
 0x319   : > { %v1393_v55 = vmul.f32 0.0078125, %v1385_v47 }
 0x31a   : > { %v1387_v12 = vpop.xlane.xlu1 %1386 }
 0x31b   : > { %v1394_v20 = vmul.f32 0.0078125, %v1387_v12  ;;  %v1413_v25 = vmul.f32 %v1393_v55, %v1393_v55  ;;  %v1425_v24 = vsub.f32 %v2679_v32, %v1393_v55 }
 0x31c   : > { %v1402_v56 = vpop.xlane.xlu0 %1401 }
 0x31d   : > { %v1409_v23 = vmul.f32 0.0078125, %v1402_v56  ;;  %v1414_v57 = vmul.f32 %v1394_v20, %v1394_v20  ;;  %v1426_v28 = vsub.f32 %v2681_v38, %v1394_v20 }
 0x31e   : > { %v1404_v2 = vpop.xlane.xlu1 %1403 }
 0x31f   : > { %v1417_v35 = vsub.f32 %v1409_v23, %v1413_v25  ;;  %v1410_v59 = vmul.f32 0.0078125, %v1404_v2 }
 0x321   : > { %v1421_v10 = vmax.f32 %v1417_v35, 0.0  ;;  %v1418_v60 = vsub.f32 %v1410_v59, %v1414_v57 }
 0x322   : > { %v1389_v14 = vpop.xlane.xlu0 %1388 }
 0x323   : > { %v1429_v61 = vadd.f32 1e-05, %v1421_v10  ;;  %v1422_v62 = vmax.f32 %v1418_v60, 0.0  ;;  %v1395_v63 = vmul.f32 0.0078125, %v1389_v14 }
 0x324   : > { %v1391_v3 = vpop.xlane.xlu1 %1390 }
 0x325   : > { %2190 = vrsqrt.f32 %v1429_v61  ;;  %v1430_v0 = vadd.f32 1e-05, %v1422_v62  ;;  %v1396_v11 = vmul.f32 0.0078125, %v1391_v3  ;;  %v1415_v15 = vmul.f32 %v1395_v63, %v1395_v63 }
 0x326   : > { %v1406_v4 = vpop.xlane.xlu0 %1405  ;;  %v1427_v42 = vsub.f32 %v2689_v43, %v1395_v63  ;;  %v1989_v43 = vld [vmem:[%s2845_s10] ss:$0 sm:$0xff] }
 0x327   : > { %2192 = vrsqrt.f32 %v1430_v0  ;;  %v1411_v5 = vmul.f32 0.0078125, %v1406_v4  ;;  %v1416_v8 = vmul.f32 %v1396_v11, %v1396_v11  ;;  %v1428_v49 = vsub.f32 %v2691_v7, %v1396_v11 }
 0x328   : > { %v1408_v6 = vpop.xlane.xlu1 %1407 }
 0x329   : > { %v1419_v9 = vsub.f32 %v1411_v5, %v1415_v15  ;;  %v1412_v13 = vmul.f32 0.0078125, %v1408_v6  ;;  %v2180_v15 = vld [vmem:[%s2848_s13] sm:$0xff]   ;;  %v2181_v5 = vld [vmem:[%s2848_s13 + $0x8] sm:$0xff]  }
 0x32a   : > { %2099 = vmatprep.subr.bf16.mxu1 %v2180_v15 }
 0x32b   : > { %v1423_v17 = vmax.f32 %v1419_v9, 0.0  ;;  %v1420_v19 = vsub.f32 %v1412_v13, %v1416_v8  ;;  %2100 = vmatpush3.bf16.msra.mxu1 %v2180_v15 }
 0x32c   : > { %2101 = vmatprep.subr.bf16.mxu1 %v2181_v5 }
 0x32d   : > { %v1431_v27 = vadd.f32 1e-05, %v1423_v17  ;;  %v1424_v26 = vmax.f32 %v1420_v19, 0.0 }
 0x32f   : > { %v2191_v30 = vpop.eup %2190  ;;  %2194 = vrsqrt.f32 %v1431_v27  ;;  %v1432_v29 = vadd.f32 1e-05, %v1424_v26  ;;  %2102 = vmatpush3.bf16.msra.mxu1 %v2181_v5 }
 0x330   : > { %v1437_v36 = vmul.f32 %v2191_v30, %v1425_v24 }
 0x331   : > { %v2193_v40 = vpop.eup %2192  ;;  %2196 = vrsqrt.f32 %v1432_v29 }
 0x332   : > { %v1438_v44 = vmul.f32 %v2193_v40, %v1426_v28  ;;  %v1448_v32 = vmul.f32 %v1987_v34, %v1437_v36 }
 0x334   : > { %v1449_v39 = vmul.f32 %v1987_v34, %v1438_v44  ;;  %v1459_v41 = vadd.f32 %v1988_v31, %v1448_v32 }
 0x336   : > { %v1460_v58 = vadd.f32 %v1988_v31, %v1449_v39  ;;  %v1463_v45 = vmul.f32 0.2, %v1459_v41 }
 0x338   : > { %v1464_v53 = vmul.f32 0.2, %v1460_v58  ;;  %v1467_v38 = vmax.f32 %v1459_v41, %v1463_v45 }
 0x339   : > { %v2195_v1 = vpop.eup %2194 }
 0x33a   : > { %v1468_v37 = vmax.f32 %v1460_v58, %v1464_v53  ;;  %v1439_v46 = vmul.f32 %v2195_v1, %v1427_v42 }
 0x33b   : > { %v2197_v21 = vpop.eup %2196 }
 0x33c   : > { %v1471_v16 = vpack.c.bf16 %v1468_v37, %v1467_v38  ;;  %v1440_v48 = vmul.f32 %v2197_v21, %v1428_v49  ;;  %v1450_v33 = vmul.f32 %v1987_v34, %v1439_v46 }
 0x33e   : > { %2095 = vmatprep.mubr.bf16.mxu0 %v1471_v16  ;;  %v1451_v50 = vmul.f32 %v1987_v34, %v1440_v48  ;;  %v1461_v51 = vadd.f32 %v1988_v31, %v1450_v33 }
 0x340   : > { %v1462_v18 = vadd.f32 %v1988_v31, %v1451_v50  ;;  %v1465_v52 = vmul.f32 0.2, %v1461_v51 }
 0x342   : > { %v1466_v54 = vmul.f32 0.2, %v1462_v18  ;;  %v1469_v22 = vmax.f32 %v1461_v51, %v1465_v52  ;;  %v1998_v51 = vld [vmem:[%s2846_s11] ss:$0 sm:$0xff] }
 0x344   : > { %v1470_v47 = vmax.f32 %v1462_v18, %v1466_v54 }
 0x346   : > { %v1472_v55 = vpack.c.bf16 %v1470_v47, %v1469_v22  ;;  %v1999_v22 = vld [vmem:[%s2847_s12] ss:$0 sm:$0xff] }
 0x348   : > { %2096 = vmatmul.mubr.bf16.vlgmr.msra.gmra.mrb[16].mxu0 %v1472_v55 }
 0x41b   : > { %v2097_v7 = vpop.f32.mrb[16].mxu0 }
 0x41c   : > { %v2736_v12 = vadd.f32 %v2097_v7, %v1989_v43  ;;  %v1578_v20 = vpop.f32.mrb[17].mxu0 }
 0x41d   : > { %v2098_v56 = vpop.f32.mrb[18].mxu0  ;;  %v2738_v25 = vadd.f32 %v1989_v43, %v1578_v20 }
 0x41e   : > { %v2740_v23 = vadd.f32 %v2098_v56, %v1989_v43  ;;  %v1581_v2 = vpop.f32.mrb[19].mxu0  ;;  %v1600_v57 = vsel %vm1593_vm1, %v2736_v12, 0.0  ;;  %v1613_v63 = vmul.f32 %v2736_v12, %v2736_v12 }
 0x41f   : > { %1601 = vadd.xlane.f32.xlu0 %v1600_v57  ;;  %v2744_v35 = vadd.f32 %v1989_v43, %v1581_v2  ;;  %v1594_v10 = vsel %vm1593_vm1, %v2738_v25, 0.0  ;;  %v1611_v60 = vmul.f32 %v2738_v25, %v2738_v25 }
 0x420   : > { %v1603_v59 = vsel %vm1593_vm1, %v2740_v23, 0.0  ;;  %v1614_v3 = vmul.f32 %v2740_v23, %v2740_v23  ;;  %v1621_v11 = vsel %vm1593_vm1, %v1613_v63, 0.0 }
 0x421   : > { %1604 = vadd.xlane.f32.xlu1 %v1603_v59  ;;  %v1597_v61 = vsel %vm1593_vm1, %v2744_v35, 0.0  ;;  %v1612_v62 = vmul.f32 %v2744_v35, %v2744_v35  ;;  %v1615_v14 = vsel %vm1593_vm1, %v1611_v60, 0.0 }
 0x422   : > { %v1624_v4 = vsel %vm1593_vm1, %v1614_v3, 0.0 }
 0x423   : > { %1595 = vadd.xlane.f32.xlu0 %v1594_v10  ;;  %v1618_v0 = vsel %vm1593_vm1, %v1612_v62, 0.0 }
 0x425   : > { %1598 = vadd.xlane.f32.xlu1 %v1597_v61 }
 0x427   : > { %1616 = vadd.xlane.f32.xlu0 %v1615_v14 }
 0x429   : > { %1619 = vadd.xlane.f32.xlu1 %v1618_v0 }
 0x42b   : > { %1622 = vadd.xlane.f32.xlu0 %v1621_v11 }
 0x42d   : > { %1625 = vadd.xlane.f32.xlu1 %v1624_v4 }
 0x4ac   : > { %v1602_v6 = vpop.xlane.xlu0 %1601 }
 0x4ad   : > { %v1609_v27 = vmul.f32 0.03125, %v1602_v6  ;;  %v2000_v6 = vld [vmem:[%s2849_s14] ss:$0 sm:$0xff] }
 0x4ae   : > { %v1605_v8 = vpop.xlane.xlu1 %1604 }
 0x4af   : > { %v1610_v34 = vmul.f32 0.03125, %v1605_v8  ;;  %v1633_v44 = vmul.f32 %v1609_v27, %v1609_v27  ;;  %v1645_v47 = vsub.f32 %v2736_v12, %v1609_v27 }
 0x4b0   : > { %v1596_v9 = vpop.xlane.xlu0 %1595 }
 0x4b1   : > { %v1607_v13 = vmul.f32 0.03125, %v1596_v9  ;;  %v1634_v58 = vmul.f32 %v1610_v34, %v1610_v34  ;;  %v1646_v20 = vsub.f32 %v2740_v23, %v1610_v34 }
 0x4b2   : > { %v1599_v17 = vpop.xlane.xlu1 %1598 }
 0x4b3   : > { %v1608_v19 = vmul.f32 0.03125, %v1599_v17  ;;  %v1631_v26 = vmul.f32 %v1607_v13, %v1607_v13  ;;  %v1643_v33 = vsub.f32 %v2738_v25, %v1607_v13 }
 0x4b4   : > { %v1617_v24 = vpop.xlane.xlu0 %1616 }
 0x4b5   : > { %v1627_v30 = vmul.f32 0.03125, %v1617_v24  ;;  %v1632_v29 = vmul.f32 %v1608_v19, %v1608_v19  ;;  %v1644_v18 = vsub.f32 %v2744_v35, %v1608_v19 }
 0x4b6   : > { %v1620_v28 = vpop.xlane.xlu1 %1619 }
 0x4b7   : > { %v1635_v36 = vsub.f32 %v1627_v30, %v1631_v26  ;;  %v1628_v40 = vmul.f32 0.03125, %v1620_v28 }
 0x4b8   : > { %v1623_v31 = vpop.xlane.xlu0 %1622 }
 0x4b9   : > { %v1639_v32 = vmax.f32 %v1635_v36, 0.0  ;;  %v1636_v39 = vsub.f32 %v1628_v40, %v1632_v29  ;;  %v1629_v41 = vmul.f32 0.03125, %v1623_v31 }
 0x4ba   : > { %v1626_v45 = vpop.xlane.xlu1 %1625 }
 0x4bb   : > { %v1647_v53 = vadd.f32 1e-05, %v1639_v32  ;;  %v1640_v42 = vmax.f32 %v1636_v39, 0.0  ;;  %v1637_v1 = vsub.f32 %v1629_v41, %v1633_v44  ;;  %v1630_v38 = vmul.f32 0.03125, %v1626_v45 }
 0x4bd   : > { %2198 = vrsqrt.f32 %v1647_v53  ;;  %v1648_v37 = vadd.f32 1e-05, %v1640_v42  ;;  %v1641_v49 = vmax.f32 %v1637_v1, 0.0  ;;  %v1638_v46 = vsub.f32 %v1630_v38, %v1634_v58 }
 0x4bf   : > { %2200 = vrsqrt.f32 %v1648_v37  ;;  %v1649_v21 = vadd.f32 1e-05, %v1641_v49  ;;  %v1642_v16 = vmax.f32 %v1638_v46, 0.0 }
 0x4c1   : > { %2202 = vrsqrt.f32 %v1649_v21  ;;  %v1650_v48 = vadd.f32 1e-05, %v1642_v16 }
 0x4c3   : > { %2204 = vrsqrt.f32 %v1650_v48 }
 0x4c7   : > { %v2199_v50 = vpop.eup %2198 }
 0x4c8   : > { %v1655_v52 = vmul.f32 %v2199_v50, %v1643_v33 }
 0x4c9   : > { %v2201_v54 = vpop.eup %2200 }
 0x4ca   : > { %v1656_v55 = vmul.f32 %v2201_v54, %v1644_v18  ;;  %v1666_v43 = vmul.f32 %v1998_v51, %v1655_v52 }
 0x4cb   : > { %v2203_v7 = vpop.eup %2202 }
 0x4cc   : > { %v1657_v56 = vmul.f32 %v2203_v7, %v1645_v47  ;;  %v1667_v25 = vmul.f32 %v1998_v51, %v1656_v55  ;;  %v1677_v2 = vadd.f32 %v1999_v22, %v1666_v43 }
 0x4cd   : > { %v2205_v57 = vpop.eup %2204 }
 0x4ce   : > { %v1668_v59 = vmul.f32 %v1998_v51, %v1657_v56  ;;  %v1658_v10 = vmul.f32 %v2205_v57, %v1646_v20  ;;  %v1678_v35 = vadd.f32 %v1999_v22, %v1667_v25  ;;  %v1681_v60 = vmul.f32 0.2, %v1677_v2 }
 0x4d0   : > { %v1669_v61 = vmul.f32 %v1998_v51, %v1658_v10  ;;  %v1679_v62 = vadd.f32 %v1999_v22, %v1668_v59  ;;  %v1682_v14 = vmul.f32 0.2, %v1678_v35  ;;  %v1685_v0 = vmax.f32 %v1677_v2, %v1681_v60 }
 0x4d2   : > { %v1680_v63 = vadd.f32 %v1999_v22, %v1669_v61  ;;  %v1686_v3 = vmax.f32 %v1678_v35, %v1682_v14  ;;  %v1683_v12 = vmul.f32 0.2, %v1679_v62 }
 0x4d4   : > { %v1689_v11 = vpack.c.bf16 %v1686_v3, %v1685_v0  ;;  %v1684_v4 = vmul.f32 0.2, %v1680_v63  ;;  %v1687_v23 = vmax.f32 %v1679_v62, %v1683_v12  ;;  %v2006_v3 = vld [vmem:[%s2851_s16] ss:$0 sm:$0xff] }
 0x4d6   : > { %2103 = vmatprep.mubr.msk.bf16.mxu1 %vm1593_vm1, %v1689_v11  ;;  %v1688_v15 = vmax.f32 %v1680_v63, %v1684_v4  ;;  %v2005_v63 = vld [vmem:[%s2850_s15] ss:$0 sm:$0xff] }
 0x4d8   : > { %v1690_v5 = vpack.c.bf16 %v1688_v15, %v1687_v23 }
 0x4da   : > { %2104 = vmatmul.mubr.msk.bf16.vlgmr.msra.gmra.mrb[16].mxu1 %vm1593_vm1, %v1690_v5 }
 0x5ad   : > { %v2105_v8 = vpop.f32.mrb[16].mxu1 }
 0x5ae   : > { %v2785_v9 = vadd.f32 %v2105_v8, %v2000_v6  ;;  %v1754_v13 = vpop.f32.mrb[17].mxu1 }
 0x5af   : > { %v2787_v17 = vadd.f32 %v2000_v6, %v1754_v13  ;;  %v2106_v19 = vpop.f32.mrb[18].mxu1 }
 0x5b0   : > { %v1757_v24 = vpop.f32.mrb[19].mxu1  ;;  %v1776_v27 = vsel %vm1769_vm2, %v2785_v9, 0.0  ;;  %v2797_v28 = vadd.f32 %v2106_v19, %v2000_v6  ;;  %v1789_v44 = vmul.f32 %v2785_v9, %v2785_v9 }
 0x5b1   : > { %v2791_v26 = vadd.f32 %v2000_v6, %v1757_v24  ;;  %1777 = vadd.xlane.f32.xlu0 %v1776_v27  ;;  %v1787_v34 = vmul.f32 %v2787_v17, %v2787_v17  ;;  %v1770_v29 = vsel %vm1769_vm2, %v2787_v17, 0.0 }
 0x5b2   : > { %v1779_v31 = vsel %vm1769_vm2, %v2797_v28, 0.0  ;;  %v1790_v39 = vmul.f32 %v2797_v28, %v2797_v28  ;;  %v1797_v41 = vsel %vm1769_vm2, %v1789_v44, 0.0 }
 0x5b3   : > { %v1773_v30 = vsel %vm1769_vm2, %v2791_v26, 0.0  ;;  %v1791_v36 = vsel %vm1769_vm2, %v1787_v34, 0.0  ;;  %v1788_v40 = vmul.f32 %v2791_v26, %v2791_v26 }
 0x5b4   : > { %1774 = vadd.xlane.f32.xlu1 %v1773_v30  ;;  %v1800_v58 = vsel %vm1769_vm2, %v1790_v39, 0.0 }
 0x5b5   : > { %1771 = vadd.xlane.f32.xlu0 %v1770_v29  ;;  %v1794_v32 = vsel %vm1769_vm2, %v1788_v40, 0.0 }
 0x5b8   : > { %1792 = vadd.xlane.f32.xlu1 %v1791_v36 }
 0x5b9   : > { %1780 = vadd.xlane.f32.xlu0 %v1779_v31 }
 0x5bc   : > { %1795 = vadd.xlane.f32.xlu1 %v1794_v32 }
 0x5bd   : > { %1798 = vadd.xlane.f32.xlu0 %v1797_v41 }
 0x5c0   : > { %1801 = vadd.xlane.f32.xlu1 %v1800_v58 }
 0x63e   : > { %v1778_v45 = vpop.xlane.xlu0 %1777 }
 0x63f   : > { %v1785_v16 = vmul.f32 0.125, %v1778_v45 }
 0x641   : > { %v1775_v53 = vpop.xlane.xlu1 %1774  ;;  %v1809_v22 = vmul.f32 %v1785_v16, %v1785_v16  ;;  %v1821_v23 = vsub.f32 %v2785_v9, %v1785_v16 }
 0x642   : > { %v1772_v42 = vpop.xlane.xlu0 %1771  ;;  %v1784_v49 = vmul.f32 0.125, %v1775_v53 }
 0x643   : > { %v1783_v1 = vmul.f32 0.125, %v1772_v42 }
 0x644   : > { %v1808_v50 = vmul.f32 %v1784_v49, %v1784_v49  ;;  %v1820_v12 = vsub.f32 %v2791_v26, %v1784_v49 }
 0x645   : > { %v1807_v38 = vmul.f32 %v1783_v1, %v1783_v1  ;;  %v1793_v37 = vpop.xlane.xlu1 %1792  ;;  %v1819_v62 = vsub.f32 %v2787_v17, %v1783_v1 }
 0x646   : > { %v1803_v46 = vmul.f32 0.125, %v1793_v37  ;;  %v1781_v21 = vpop.xlane.xlu0 %1780 }
 0x647   : > { %v1786_v18 = vmul.f32 0.125, %v1781_v21 }
 0x648   : > { %v1811_v48 = vsub.f32 %v1803_v46, %v1807_v38 }
 0x649   : > { %v1796_v33 = vpop.xlane.xlu1 %1795  ;;  %v1810_v56 = vmul.f32 %v1786_v18, %v1786_v18  ;;  %v1822_v17 = vsub.f32 %v2797_v28, %v1786_v18 }
 0x64a   : > { %v1815_v51 = vmax.f32 %v1811_v48, 0.0  ;;  %v1804_v52 = vmul.f32 0.125, %v1796_v33  ;;  %v1799_v54 = vpop.xlane.xlu0 %1798 }
 0x64b   : > { %v1805_v47 = vmul.f32 0.125, %v1799_v54 }
 0x64c   : > { %v1823_v55 = vadd.f32 1e-05, %v1815_v51  ;;  %v1812_v43 = vsub.f32 %v1804_v52, %v1808_v50 }
 0x64d   : > { %v1813_v7 = vsub.f32 %v1805_v47, %v1809_v22  ;;  %v1802_v20 = vpop.xlane.xlu1 %1801 }
 0x64e   : > { %2206 = vrsqrt.f32 %v1823_v55  ;;  %v1816_v25 = vmax.f32 %v1812_v43, 0.0  ;;  %v1806_v2 = vmul.f32 0.125, %v1802_v20 }
 0x64f   : > { %v1817_v57 = vmax.f32 %v1813_v7, 0.0 }
 0x650   : > { %v1824_v59 = vadd.f32 1e-05, %v1816_v25  ;;  %v1814_v10 = vsub.f32 %v1806_v2, %v1810_v56 }
 0x651   : > { %v1825_v35 = vadd.f32 1e-05, %v1817_v57 }
 0x652   : > { %2208 = vrsqrt.f32 %v1824_v59  ;;  %v1818_v60 = vmax.f32 %v1814_v10, 0.0 }
 0x653   : > { %2210 = vrsqrt.f32 %v1825_v35 }
 0x654   : > { %v1826_v61 = vadd.f32 1e-05, %v1818_v60 }
 0x656   : > { %2212 = vrsqrt.f32 %v1826_v61 }
 0x658   : > { %v2207_v14 = vpop.eup %2206 }
 0x659   : > { %v1831_v0 = vmul.f32 %v2207_v14, %v1819_v62 }
 0x65b   : > { %v1842_v11 = vmul.f32 %v2005_v63, %v1831_v0 }
 0x65c   : > { %v2209_v4 = vpop.eup %2208 }
 0x65d   : > { %v2211_v15 = vpop.eup %2210  ;;  %v1853_v5 = vadd.f32 %v2006_v3, %v1842_v11  ;;  %v1832_v6 = vmul.f32 %v2209_v4, %v1820_v12 }
 0x65e   : > { %v1833_v8 = vmul.f32 %v2211_v15, %v1821_v23 }
 0x65f   : > { %v1857_v13 = vmul.f32 0.2, %v1853_v5  ;;  %v1843_v19 = vmul.f32 %v2005_v63, %v1832_v6 }
 0x660   : > { %v2213_v24 = vpop.eup %2212  ;;  %v1844_v27 = vmul.f32 %v2005_v63, %v1833_v8 }
 0x661   : > { %v1861_v26 = vmax.f32 %v1853_v5, %v1857_v13  ;;  %v1854_v30 = vadd.f32 %v2006_v3, %v1843_v19  ;;  %v1834_v34 = vmul.f32 %v2213_v24, %v1822_v17 }
 0x662   : > { %v1855_v29 = vadd.f32 %v2006_v3, %v1844_v27 }
 0x663   : > { %1865 = vst.msk [vmem:[%s550_s0] sm:$0xff] %vm1769_vm2, %v1861_v26  ;;  %v1858_v9 = vmul.f32 0.2, %v1854_v30  ;;  %v1845_v36 = vmul.f32 %v2005_v63, %v1834_v34 }
 0x664   : > { %v1859_v40 = vmul.f32 0.2, %v1855_v29 }
 0x665   : > { %v1862_v31 = vmax.f32 %v1854_v30, %v1858_v9  ;;  %v1856_v44 = vadd.f32 %v2006_v3, %v1845_v36 }
 0x666   : > { %v1863_v28 = vmax.f32 %v1855_v29, %v1859_v40 }
 0x667   : > { %1866 = vst.msk [vmem:[%s550_s0 + $0x8] sm:$0xff] %vm1769_vm2, %v1862_v31  ;;  %v1860_v32 = vmul.f32 0.2, %v1856_v44 }
 0x668   : > { %1867 = vst.msk [vmem:[%s550_s0 + $0x10] sm:$0xff] %vm1769_vm2, %v1863_v28 }
 0x669   : > { %v1864_v39 = vmax.f32 %v1856_v44, %v1860_v32 }
 0x66b   : > { %1868 = vst.msk [vmem:[%s550_s0 + $0x18] sm:$0xff] %vm1769_vm2, %v1864_v39 }
 0x66c PF: > { %s2860_s29 = sld [smem:[#allocation2_spill]] }
 0x672   : > { %s27_s24 = sadd.s32 1, %s2860_s29  }
 0x673   : > { %p24_p4 = scmp.ge.s32.totalorder %s27_s24, 4  }
 0x675   :  { %26 = sbr.rel (!%p24_p4) target bundleno = 3 (0x3), region = 118 }

</bundles_post_ra>
